<compile_context>
chip_gen: v7x
topology: tpu7x:2x2x1
jax: 0.10.0
libtpu: 0.0.40
codegen_flags: <defaults>
</compile_context>

<pallas_src>
import functools

import jax
import jax.numpy as jnp
from jax.experimental import pallas as pl
from jax.experimental.pallas import tpu as pltpu


HIDDEN = 8  # hidden channel count (one full sublane group)


# -----------------------------------------------------------------------------
# In-kernel helpers
# -----------------------------------------------------------------------------
def _col_keep_masks(H, W):
    """Lane masks for the dw = -1 / +1 taps (column halo), shape (1, H*W)."""
    HW = H * W
    lane = jax.lax.broadcasted_iota(jnp.int32, (1, HW), 1)
    if (W & (W - 1)) == 0:            # power-of-two width: cheap bitwise AND
        col = jnp.bitwise_and(lane, W - 1)
    else:
        col = lane % W
    return {-1: col != 0, 1: col != (W - 1)}


def _conv3x3_flat(x, w_ref, b_ref, col_keep, H, W, relu):
    """3x3 'same' conv + bias (+ReLU) on a lane-dense flat activation.

    x       : (Cin, H*W)  f32 value (row-major flattened spatial dims)
    w_ref   : (9, Cout, Cin) weights ref; tap t = (dh+1)*3 + (dw+1)
    b_ref   : (Cout, 1) bias ref
    returns : (Cout, H*W) f32 value
    """
    HW = H * W
    cin = x.shape[0]
    cout = w_ref.shape[1]

    # Flat zero padding of one (row + 1) on each side handles the row halo:
    # reading flat index p+off lands in the zero pad whenever h+dh is out of
    # range; the column halo (w+dw out of range) is handled by col_keep masks.
    pad = jnp.zeros((cin, W + 1), jnp.float32)
    xp = jnp.concatenate([pad, x, pad], axis=1)          # (Cin, HW + 2W + 2)

    acc = jnp.zeros((cout, HW), jnp.float32)
    t = 0
    for dh in (-1, 0, 1):
        for dw in (-1, 0, 1):
            start = (W + 1) + dh * W + dw                # static slice start
            xs = xp[:, start:start + HW]                 # (Cin, HW)
            if dw != 0:
                xs = jnp.where(col_keep[dw], xs, 0.0)
            acc = acc + jnp.dot(w_ref[t], xs,
                                preferred_element_type=jnp.float32)
            t += 1

    acc = acc + b_ref[...]                               # (Cout, 1) broadcast
    if relu:
        acc = jnp.maximum(acc, 0.0)
    return acc


# -----------------------------------------------------------------------------
# Fused kernels (one per sub-network)
# -----------------------------------------------------------------------------
def _generator_kernel(rate_ref, x_ref, w1, b1, w2, b2, w3, b3,
                      img_ref, msk_ref, lerp_ref, *, H, W):
    """Generator conv stack + rate-interpolation epilogue, one batch element.

    rate_ref : (1,) f32 in SMEM
    x_ref    : (1, 3, H*W) input block
    img_ref  : (1, 3, H*W) generated images (pre-lerp)
    msk_ref  : (1, 2, H*W) generated masks
    lerp_ref : (1, 3, H*W) rate * x + (1 - rate) * generated_images
    """
    x = x_ref[0].astype(jnp.float32)                     # (3, HW)
    keep = _col_keep_masks(H, W)                         # hoisted, reused by all layers

    h = _conv3x3_flat(x, w1, b1, keep, H, W, relu=True)
    h = _conv3x3_flat(h, w2, b2, keep, H, W, relu=True)
    o = _conv3x3_flat(h, w3, b3, keep, H, W, relu=False)  # (5, HW)

    img = o[0:3, :]
    img_ref[0] = img.astype(img_ref.dtype)
    msk_ref[0] = o[3:5, :].astype(msk_ref.dtype)

    r = rate_ref[0]
    lerp_ref[0] = (r * x + (1.0 - r) * img).astype(lerp_ref.dtype)


def _segmentor_kernel(x_ref, w1, b1, w2, b2, w3, b3, out_ref, *, H, W):
    """Segmentor conv stack, one batch element: (1,3,HW) -> (1,2,HW)."""
    x = x_ref[0].astype(jnp.float32)
    keep = _col_keep_masks(H, W)
    h = _conv3x3_flat(x, w1, b1, keep, H, W, relu=True)
    h = _conv3x3_flat(h, w2, b2, keep, H, W, relu=True)
    o = _conv3x3_flat(h, w3, b3, keep, H, W, relu=False)  # (2, HW)
    out_ref[0] = o.astype(out_ref.dtype)


# -----------------------------------------------------------------------------
# Pallas wrappers
# -----------------------------------------------------------------------------
# TODO(synk): at realistic UNet resolutions the whole (1, C, H*W) image should
# be tiled spatially (row blocks with a 1-row halo) and vmem_limit_bytes set
# per generation (v7x has 64 MiB VMEM); at 16x16 one block per image is tiny.
def generator_forward(params, x_flat, rate_arr, H, W):
    """x_flat: (N, 3, H*W) -> (gen_images, gen_masks, lerped), each (N, C, H*W)."""
    N, cin, HW = x_flat.shape
    kernel = functools.partial(_generator_kernel, H=H, W=W)
    wmap3 = lambda n: (0, 0, 0)
    wmap2 = lambda n: (0, 0)
    return pl.pallas_call(
        kernel,
        out_shape=(
            jax.ShapeDtypeStruct((N, 3, HW), jnp.float32),
            jax.ShapeDtypeStruct((N, 2, HW), jnp.float32),
            jax.ShapeDtypeStruct((N, 3, HW), jnp.float32),
        ),
        grid=(N,),
        in_specs=[
            pl.BlockSpec(memory_space=pltpu.MemorySpace.SMEM),      # rate (1,)
            pl.BlockSpec((1, cin, HW), lambda n: (n, 0, 0)),
            pl.BlockSpec(params["g1_w"].shape, wmap3),
            pl.BlockSpec(params["g1_b"].shape, wmap2),
            pl.BlockSpec(params["g2_w"].shape, wmap3),
            pl.BlockSpec(params["g2_b"].shape, wmap2),
            pl.BlockSpec(params["g3_w"].shape, wmap3),
            pl.BlockSpec(params["g3_b"].shape, wmap2),
        ],
        out_specs=(
            pl.BlockSpec((1, 3, HW), lambda n: (n, 0, 0)),
            pl.BlockSpec((1, 2, HW), lambda n: (n, 0, 0)),
            pl.BlockSpec((1, 3, HW), lambda n: (n, 0, 0)),
        ),
        compiler_params=pltpu.CompilerParams(
            dimension_semantics=("parallel",)),
    )(rate_arr, x_flat,
      params["g1_w"], params["g1_b"], params["g2_w"], params["g2_b"],
      params["g3_w"], params["g3_b"])


def segmentor_forward(params, x_flat, H, W):
    """x_flat: (B, 3, H*W) -> predicted masks (B, 2, H*W)."""
    B, cin, HW = x_flat.shape
    kernel = functools.partial(_segmentor_kernel, H=H, W=W)
    wmap3 = lambda b: (0, 0, 0)
    wmap2 = lambda b: (0, 0)
    return pl.pallas_call(
        kernel,
        out_shape=jax.ShapeDtypeStruct((B, 2, HW), jnp.float32),
        grid=(B,),
        in_specs=[
            pl.BlockSpec((1, cin, HW), lambda b: (b, 0, 0)),
            pl.BlockSpec(params["s1_w"].shape, wmap3),
            pl.BlockSpec(params["s1_b"].shape, wmap2),
            pl.BlockSpec(params["s2_w"].shape, wmap3),
            pl.BlockSpec(params["s2_b"].shape, wmap2),
            pl.BlockSpec(params["s3_w"].shape, wmap3),
            pl.BlockSpec(params["s3_b"].shape, wmap2),
        ],
        out_specs=pl.BlockSpec((1, 2, HW), lambda b: (b, 0, 0)),
        compiler_params=pltpu.CompilerParams(
            dimension_semantics=("parallel",)),
    )(x_flat, params["s1_w"], params["s1_b"], params["s2_w"], params["s2_b"],
      params["s3_w"], params["s3_b"])


# -----------------------------------------------------------------------------
# Parameter init (deterministic, synthetic stand-ins for the two UNets)
# -----------------------------------------------------------------------------
def _conv_init(key, cin, cout):
    # weights stored as (9, Cout, Cin): tap t = (dh+1)*3 + (dw+1)
    fan_in = 9 * cin
    w = jax.random.normal(key, (9, cout, cin), jnp.float32) * (2.0 / fan_in) ** 0.5
    b = jnp.zeros((cout, 1), jnp.float32)
    return w, b


def init_params(key):
    # TODO(synk): the real generator/segmentor are a checkpoint-loaded
    # unet_withoutskip (in=3, out=5, frozen) and a UNet (in=3, out=2); their
    # internals are not reproducible here, so deterministic 3-layer conv
    # stacks with identical I/O contracts stand in.
    ks = jax.random.split(key, 6)
    p = {}
    p["g1_w"], p["g1_b"] = _conv_init(ks[0], 3, HIDDEN)
    p["g2_w"], p["g2_b"] = _conv_init(ks[1], HIDDEN, HIDDEN)
    p["g3_w"], p["g3_b"] = _conv_init(ks[2], HIDDEN, 5)
    p["s1_w"], p["s1_b"] = _conv_init(ks[3], 3, HIDDEN)
    p["s2_w"], p["s2_b"] = _conv_init(ks[4], HIDDEN, HIDDEN)
    p["s3_w"], p["s3_b"] = _conv_init(ks[5], HIDDEN, 2)
    return p


# -----------------------------------------------------------------------------
# Forward (mirrors ExpandMani_AE_SpatInterTVstyle.forward)
# -----------------------------------------------------------------------------
def forward(params, x_nchw, phase, truth_masks, rate,
            z_vectors=None, aug=None, rescale_rate=False):
    del z_vectors  # dummy, kept for interface parity with the AE
    if rescale_rate:
        rate = rate * 8 / 10

    N, C, H, W = x_nchw.shape
    HW = H * W
    x_flat = x_nchw.astype(jnp.float32).reshape(N, C, HW)   # NCHW -> (N, C, H*W)
    rate_arr = jnp.asarray(rate, jnp.float32).reshape(1)

    # torch.set_grad_enabled(False) around the frozen generator; the lerp
    # (rate * x + (1 - rate) * gen) is fused into the generator kernel epilogue.
    gen = generator_forward(params, x_flat, rate_arr, H, W)
    gen_images, gen_masks, lerped = jax.lax.stop_gradient(gen)
    del gen_masks  # not consumed by forward (matches the PyTorch reference)

    # catOrSplit([generated_images, x]) — NOTE: uses the PRE-lerp generated
    # images, exactly as in the PyTorch reference (cat happens before the lerp).
    input_images = jnp.concatenate([gen_images, x_flat], axis=0)

    generated_images = gen_images
    if phase == "train":
        generated_images = lerped          # rate * x + (1 - rate) * generated
        if aug is not None:
            truth_masks = jnp.concatenate([truth_masks] * 3, axis=0)
            x_aug = aug(x_nchw.astype(jnp.float32)).reshape(N, C, HW)
            input_images = jnp.concatenate(
                [x_flat, generated_images, x_aug], axis=0)
        else:
            truth_masks = jnp.concatenate([truth_masks, truth_masks], axis=0)

    predicted_masks = segmentor_forward(params, input_images, H, W)

    if phase != "train":
        _, predicted_masks = jnp.split(predicted_masks, 2, axis=0)

    # back to PyTorch NCHW convention
    generated_images = generated_images.reshape(-1, 3, H, W)
    predicted_masks = predicted_masks.reshape(-1, 2, H, W)
    return generated_images, predicted_masks, truth_masks


# -----------------------------------------------------------------------------
# Pure-JAX reference (for a structural correctness check of the conv kernel)
# -----------------------------------------------------------------------------
def _conv3x3_ref(x_nchw, w9, b):
    cout, cin = w9.shape[1], w9.shape[2]
    w_oihw = jnp.transpose(w9.reshape(3, 3, cout, cin), (2, 3, 0, 1))
    y = jax.lax.conv_general_dilated(
        x_nchw, w_oihw, window_strides=(1, 1), padding=((1, 1), (1, 1)),
        dimension_numbers=("NCHW", "OIHW", "NCHW"),
        precision=jax.lax.Precision.HIGHEST)
    return y + b.reshape(1, cout, 1, 1)


def _segmentor_ref(params, x_nchw):
    h = jax.nn.relu(_conv3x3_ref(x_nchw, params["s1_w"], params["s1_b"]))
    h = jax.nn.relu(_conv3x3_ref(h, params["s2_w"], params["s2_b"]))
    return _conv3x3_ref(h, params["s3_w"], params["s3_b"])


# -----------------------------------------------------------------------------
if __name__ == "__main__":
    key = jax.random.PRNGKey(0)
    kp, kx, km = jax.random.split(key, 3)

    params = init_params(kp)

    N, C, H, W = 2, 3, 16, 16
    x = jax.random.normal(kx, (N, C, H, W), jnp.float32)            # NCHW input
    truth_masks = (jax.random.uniform(km, (N, H, W)) > 0.5).astype(jnp.int32)
    rate = 0.3

    # correctness spot-check of the fused conv kernel against lax.conv
    seg_pallas = segmentor_forward(
        params, x.reshape(N, C, H * W), H, W).reshape(N, 2, H, W)
    seg_ref = _segmentor_ref(params, x)
    jax.block_until_ready((seg_pallas, seg_ref))
    assert jnp.allclose(seg_pallas, seg_ref, atol=5e-2, rtol=5e-2), (
        "segmentor kernel mismatch vs lax.conv reference")

    # train path
    gen_imgs, pred_masks, tmasks = forward(
        params, x, "train", truth_masks, rate, rescale_rate=False)
    jax.block_until_ready((gen_imgs, pred_masks, tmasks))

    assert gen_imgs.shape == (N, 3, H, W)
    assert pred_masks.shape == (2 * N, 2, H, W)    # segmentor out_channels = 2
    assert tmasks.shape == (2 * N, H, W)           # truth masks doubled in train

    # eval path (chunk + take second half)
    _, eval_masks, _ = forward(params, x, "val", truth_masks, rate)
    jax.block_until_ready(eval_masks)
    assert eval_masks.shape == (N, 2, H, W)

    print("KERNEL_OK")
</pallas_src>

<mosaic_0001>
module attributes {stable_mosaic.version = 11 : i64} {
  func.func @_segmentor_kernel(%arg0: i32, %arg1: memref<1x3x256xf32, #tpu.memory_space<vmem>>, %arg2: memref<9x8x3xf32, #tpu.memory_space<vmem>>, %arg3: memref<8x1xf32, #tpu.memory_space<vmem>>, %arg4: memref<9x8x8xf32, #tpu.memory_space<vmem>>, %arg5: memref<8x1xf32, #tpu.memory_space<vmem>>, %arg6: memref<9x2x8xf32, #tpu.memory_space<vmem>>, %arg7: memref<2x1xf32, #tpu.memory_space<vmem>>, %arg8: memref<1x2x256xf32, #tpu.memory_space<vmem>>) attributes {dimension_semantics = [#tpu.dimension_semantics<parallel>], iteration_bounds = array<i64: 2>, scalar_prefetch = 0 : i64, scratch_operands = 0 : i64, tpu.core_type = #tpu.core_type<tc>, window_params = [{transform_indices = @transform_0, window_bounds = array<i64: 1, 3, 256>}, {pipeline_mode = #tpu.pipeline_mode<synchronous>, transform_indices = @transform_1, window_bounds = array<i64: 9, 8, 3>}, {pipeline_mode = #tpu.pipeline_mode<synchronous>, transform_indices = @transform_2, window_bounds = array<i64: 8, 1>}, {pipeline_mode = #tpu.pipeline_mode<synchronous>, transform_indices = @transform_3, window_bounds = array<i64: 9, 8, 8>}, {pipeline_mode = #tpu.pipeline_mode<synchronous>, transform_indices = @transform_4, window_bounds = array<i64: 8, 1>}, {pipeline_mode = #tpu.pipeline_mode<synchronous>, transform_indices = @transform_5, window_bounds = array<i64: 9, 2, 8>}, {pipeline_mode = #tpu.pipeline_mode<synchronous>, transform_indices = @transform_6, window_bounds = array<i64: 2, 1>}, {transform_indices = @transform_7, window_bounds = array<i64: 1, 2, 256>}]} {
    %c0 = arith.constant 0 : index
    %c0_0 = arith.constant 0 : index
    %c0_1 = arith.constant 0 : index
    %0 = vector.load %arg1[%c0, %c0_0, %c0_1] : memref<1x3x256xf32, #tpu.memory_space<vmem>>, vector<1x3x256xf32>
    %1 = vector.shape_cast %0 : vector<1x3x256xf32> to vector<3x256xf32>
    %2 = tpu.iota {dimensions = array<i32: 1>} : vector<1x256xi32>
    %c15_i32 = arith.constant 15 : i32
    %3 = vector.broadcast %c15_i32 : i32 to vector<1x256xi32>
    %4 = arith.andi %2, %3 : vector<1x256xi32>
    %c0_i32 = arith.constant 0 : i32
    %5 = vector.broadcast %c0_i32 : i32 to vector<1x256xi32>
    %6 = arith.cmpi ne, %4, %5 : vector<1x256xi32>
    %c15_i32_2 = arith.constant 15 : i32
    %7 = vector.broadcast %c15_i32_2 : i32 to vector<1x256xi32>
    %8 = arith.cmpi ne, %4, %7 : vector<1x256xi32>
    %cst = arith.constant 0.000000e+00 : f32
    %9 = vector.broadcast %cst : f32 to vector<3x17xf32>
    %10 = tpu.concatenate %9, %1, %9 in 1 : vector<3x17xf32>, vector<3x256xf32>, vector<3x17xf32> -> vector<3x290xf32>
    %cst_3 = arith.constant 0.000000e+00 : f32
    %11 = vector.broadcast %cst_3 : f32 to vector<8x256xf32>
    %12 = vector.extract_strided_slice %10 {offsets = [0, 0], sizes = [3, 256], strides = [1, 1]} : vector<3x290xf32> to vector<3x256xf32>
    %cst_4 = arith.constant 0.000000e+00 : f32
    %13 = vector.shape_cast %6 : vector<1x256xi1> to vector<1x256xi1>
    %14 = vector.broadcast %13 : vector<1x256xi1> to vector<3x256xi1>
    %15 = vector.broadcast %cst_4 : f32 to vector<3x256xf32>
    %16 = arith.select %14, %12, %15 : vector<3x256xi1>, vector<3x256xf32>
    %c0_5 = arith.constant 0 : index
    %c0_6 = arith.constant 0 : index
    %c0_7 = arith.constant 0 : index
    %17 = vector.load %arg2[%c0_5, %c0_6, %c0_7] : memref<9x8x3xf32, #tpu.memory_space<vmem>>, vector<1x8x3xf32>
    %18 = vector.shape_cast %17 : vector<1x8x3xf32> to vector<8x3xf32>
    %cst_8 = arith.constant dense<0.000000e+00> : vector<8x256xf32>
    %19 = tpu.matmul %18, %16, %cst_8 {dimension_numbers = #tpu.dot_dimension_numbers<[1], [0], [0], [1], [0, 0, 1, 1], [], []>} : vector<8x3xf32>, vector<3x256xf32>, vector<8x256xf32> -> vector<8x256xf32>
    %20 = arith.addf %11, %19 : vector<8x256xf32>
    %21 = vector.extract_strided_slice %10 {offsets = [0, 1], sizes = [3, 256], strides = [1, 1]} : vector<3x290xf32> to vector<3x256xf32>
    %c1 = arith.constant 1 : index
    %c0_9 = arith.constant 0 : index
    %c0_10 = arith.constant 0 : index
    %22 = vector.load %arg2[%c1, %c0_9, %c0_10] : memref<9x8x3xf32, #tpu.memory_space<vmem>>, vector<1x8x3xf32>
    %23 = vector.shape_cast %22 : vector<1x8x3xf32> to vector<8x3xf32>
    %cst_11 = arith.constant dense<0.000000e+00> : vector<8x256xf32>
    %24 = tpu.matmul %23, %21, %cst_11 {dimension_numbers = #tpu.dot_dimension_numbers<[1], [0], [0], [1], [0, 0, 1, 1], [], []>} : vector<8x3xf32>, vector<3x256xf32>, vector<8x256xf32> -> vector<8x256xf32>
    %25 = arith.addf %20, %24 : vector<8x256xf32>
    %26 = vector.extract_strided_slice %10 {offsets = [0, 2], sizes = [3, 256], strides = [1, 1]} : vector<3x290xf32> to vector<3x256xf32>
    %cst_12 = arith.constant 0.000000e+00 : f32
    %27 = vector.shape_cast %8 : vector<1x256xi1> to vector<1x256xi1>
    %28 = vector.broadcast %27 : vector<1x256xi1> to vector<3x256xi1>
    %29 = vector.broadcast %cst_12 : f32 to vector<3x256xf32>
    %30 = arith.select %28, %26, %29 : vector<3x256xi1>, vector<3x256xf32>
    %c2 = arith.constant 2 : index
    %c0_13 = arith.constant 0 : index
    %c0_14 = arith.constant 0 : index
    %31 = vector.load %arg2[%c2, %c0_13, %c0_14] : memref<9x8x3xf32, #tpu.memory_space<vmem>>, vector<1x8x3xf32>
    %32 = vector.shape_cast %31 : vector<1x8x3xf32> to vector<8x3xf32>
    %cst_15 = arith.constant dense<0.000000e+00> : vector<8x256xf32>
    %33 = tpu.matmul %32, %30, %cst_15 {dimension_numbers = #tpu.dot_dimension_numbers<[1], [0], [0], [1], [0, 0, 1, 1], [], []>} : vector<8x3xf32>, vector<3x256xf32>, vector<8x256xf32> -> vector<8x256xf32>
    %34 = arith.addf %25, %33 : vector<8x256xf32>
    %35 = vector.extract_strided_slice %10 {offsets = [0, 16], sizes = [3, 256], strides = [1, 1]} : vector<3x290xf32> to vector<3x256xf32>
    %cst_16 = arith.constant 0.000000e+00 : f32
    %36 = vector.shape_cast %6 : vector<1x256xi1> to vector<1x256xi1>
    %37 = vector.broadcast %36 : vector<1x256xi1> to vector<3x256xi1>
    %38 = vector.broadcast %cst_16 : f32 to vector<3x256xf32>
    %39 = arith.select %37, %35, %38 : vector<3x256xi1>, vector<3x256xf32>
    %c3 = arith.constant 3 : index
    %c0_17 = arith.constant 0 : index
    %c0_18 = arith.constant 0 : index
    %40 = vector.load %arg2[%c3, %c0_17, %c0_18] : memref<9x8x3xf32, #tpu.memory_space<vmem>>, vector<1x8x3xf32>
    %41 = vector.shape_cast %40 : vector<1x8x3xf32> to vector<8x3xf32>
    %cst_19 = arith.constant dense<0.000000e+00> : vector<8x256xf32>
    %42 = tpu.matmul %41, %39, %cst_19 {dimension_numbers = #tpu.dot_dimension_numbers<[1], [0], [0], [1], [0, 0, 1, 1], [], []>} : vector<8x3xf32>, vector<3x256xf32>, vector<8x256xf32> -> vector<8x256xf32>
    %43 = arith.addf %34, %42 : vector<8x256xf32>
    %44 = vector.extract_strided_slice %10 {offsets = [0, 17], sizes = [3, 256], strides = [1, 1]} : vector<3x290xf32> to vector<3x256xf32>
    %c4 = arith.constant 4 : index
    %c0_20 = arith.constant 0 : index
    %c0_21 = arith.constant 0 : index
    %45 = vector.load %arg2[%c4, %c0_20, %c0_21] : memref<9x8x3xf32, #tpu.memory_space<vmem>>, vector<1x8x3xf32>
    %46 = vector.shape_cast %45 : vector<1x8x3xf32> to vector<8x3xf32>
    %cst_22 = arith.constant dense<0.000000e+00> : vector<8x256xf32>
    %47 = tpu.matmul %46, %44, %cst_22 {dimension_numbers = #tpu.dot_dimension_numbers<[1], [0], [0], [1], [0, 0, 1, 1], [], []>} : vector<8x3xf32>, vector<3x256xf32>, vector<8x256xf32> -> vector<8x256xf32>
    %48 = arith.addf %43, %47 : vector<8x256xf32>
    %49 = vector.extract_strided_slice %10 {offsets = [0, 18], sizes = [3, 256], strides = [1, 1]} : vector<3x290xf32> to vector<3x256xf32>
    %cst_23 = arith.constant 0.000000e+00 : f32
    %50 = vector.shape_cast %8 : vector<1x256xi1> to vector<1x256xi1>
    %51 = vector.broadcast %50 : vector<1x256xi1> to vector<3x256xi1>
    %52 = vector.broadcast %cst_23 : f32 to vector<3x256xf32>
    %53 = arith.select %51, %49, %52 : vector<3x256xi1>, vector<3x256xf32>
    %c5 = arith.constant 5 : index
    %c0_24 = arith.constant 0 : index
    %c0_25 = arith.constant 0 : index
    %54 = vector.load %arg2[%c5, %c0_24, %c0_25] : memref<9x8x3xf32, #tpu.memory_space<vmem>>, vector<1x8x3xf32>
    %55 = vector.shape_cast %54 : vector<1x8x3xf32> to vector<8x3xf32>
    %cst_26 = arith.constant dense<0.000000e+00> : vector<8x256xf32>
    %56 = tpu.matmul %55, %53, %cst_26 {dimension_numbers = #tpu.dot_dimension_numbers<[1], [0], [0], [1], [0, 0, 1, 1], [], []>} : vector<8x3xf32>, vector<3x256xf32>, vector<8x256xf32> -> vector<8x256xf32>
    %57 = arith.addf %48, %56 : vector<8x256xf32>
    %58 = vector.extract_strided_slice %10 {offsets = [0, 32], sizes = [3, 256], strides = [1, 1]} : vector<3x290xf32> to vector<3x256xf32>
    %cst_27 = arith.constant 0.000000e+00 : f32
    %59 = vector.shape_cast %6 : vector<1x256xi1> to vector<1x256xi1>
    %60 = vector.broadcast %59 : vector<1x256xi1> to vector<3x256xi1>
    %61 = vector.broadcast %cst_27 : f32 to vector<3x256xf32>
    %62 = arith.select %60, %58, %61 : vector<3x256xi1>, vector<3x256xf32>
    %c6 = arith.constant 6 : index
    %c0_28 = arith.constant 0 : index
    %c0_29 = arith.constant 0 : index
    %63 = vector.load %arg2[%c6, %c0_28, %c0_29] : memref<9x8x3xf32, #tpu.memory_space<vmem>>, vector<1x8x3xf32>
    %64 = vector.shape_cast %63 : vector<1x8x3xf32> to vector<8x3xf32>
    %cst_30 = arith.constant dense<0.000000e+00> : vector<8x256xf32>
    %65 = tpu.matmul %64, %62, %cst_30 {dimension_numbers = #tpu.dot_dimension_numbers<[1], [0], [0], [1], [0, 0, 1, 1], [], []>} : vector<8x3xf32>, vector<3x256xf32>, vector<8x256xf32> -> vector<8x256xf32>
    %66 = arith.addf %57, %65 : vector<8x256xf32>
    %67 = vector.extract_strided_slice %10 {offsets = [0, 33], sizes = [3, 256], strides = [1, 1]} : vector<3x290xf32> to vector<3x256xf32>
    %c7 = arith.constant 7 : index
    %c0_31 = arith.constant 0 : index
    %c0_32 = arith.constant 0 : index
    %68 = vector.load %arg2[%c7, %c0_31, %c0_32] : memref<9x8x3xf32, #tpu.memory_space<vmem>>, vector<1x8x3xf32>
    %69 = vector.shape_cast %68 : vector<1x8x3xf32> to vector<8x3xf32>
    %cst_33 = arith.constant dense<0.000000e+00> : vector<8x256xf32>
    %70 = tpu.matmul %69, %67, %cst_33 {dimension_numbers = #tpu.dot_dimension_numbers<[1], [0], [0], [1], [0, 0, 1, 1], [], []>} : vector<8x3xf32>, vector<3x256xf32>, vector<8x256xf32> -> vector<8x256xf32>
    %71 = arith.addf %66, %70 : vector<8x256xf32>
    %72 = vector.extract_strided_slice %10 {offsets = [0, 34], sizes = [3, 256], strides = [1, 1]} : vector<3x290xf32> to vector<3x256xf32>
    %cst_34 = arith.constant 0.000000e+00 : f32
    %73 = vector.shape_cast %8 : vector<1x256xi1> to vector<1x256xi1>
    %74 = vector.broadcast %73 : vector<1x256xi1> to vector<3x256xi1>
    %75 = vector.broadcast %cst_34 : f32 to vector<3x256xf32>
    %76 = arith.select %74, %72, %75 : vector<3x256xi1>, vector<3x256xf32>
    %c8 = arith.constant 8 : index
    %c0_35 = arith.constant 0 : index
    %c0_36 = arith.constant 0 : index
    %77 = vector.load %arg2[%c8, %c0_35, %c0_36] : memref<9x8x3xf32, #tpu.memory_space<vmem>>, vector<1x8x3xf32>
    %78 = vector.shape_cast %77 : vector<1x8x3xf32> to vector<8x3xf32>
    %cst_37 = arith.constant dense<0.000000e+00> : vector<8x256xf32>
    %79 = tpu.matmul %78, %76, %cst_37 {dimension_numbers = #tpu.dot_dimension_numbers<[1], [0], [0], [1], [0, 0, 1, 1], [], []>} : vector<8x3xf32>, vector<3x256xf32>, vector<8x256xf32> -> vector<8x256xf32>
    %80 = arith.addf %71, %79 : vector<8x256xf32>
    %c0_38 = arith.constant 0 : index
    %c0_39 = arith.constant 0 : index
    %81 = vector.load %arg3[%c0_38, %c0_39] : memref<8x1xf32, #tpu.memory_space<vmem>>, vector<8x1xf32>
    %82 = vector.broadcast %81 : vector<8x1xf32> to vector<8x256xf32>
    %83 = arith.addf %80, %82 : vector<8x256xf32>
    %cst_40 = arith.constant 0.000000e+00 : f32
    %84 = vector.broadcast %cst_40 : f32 to vector<8x256xf32>
    %85 = arith.maximumf %83, %84 : vector<8x256xf32>
    %cst_41 = arith.constant 0.000000e+00 : f32
    %86 = vector.broadcast %cst_41 : f32 to vector<8x17xf32>
    %87 = tpu.concatenate %86, %85, %86 in 1 : vector<8x17xf32>, vector<8x256xf32>, vector<8x17xf32> -> vector<8x290xf32>
    %cst_42 = arith.constant 0.000000e+00 : f32
    %88 = vector.broadcast %cst_42 : f32 to vector<8x256xf32>
    %89 = vector.extract_strided_slice %87 {offsets = [0, 0], sizes = [8, 256], strides = [1, 1]} : vector<8x290xf32> to vector<8x256xf32>
    %cst_43 = arith.constant 0.000000e+00 : f32
    %90 = vector.shape_cast %6 : vector<1x256xi1> to vector<1x256xi1>
    %91 = vector.broadcast %90 : vector<1x256xi1> to vector<8x256xi1>
    %92 = vector.broadcast %cst_43 : f32 to vector<8x256xf32>
    %93 = arith.select %91, %89, %92 : vector<8x256xi1>, vector<8x256xf32>
    %c0_44 = arith.constant 0 : index
    %c0_45 = arith.constant 0 : index
    %c0_46 = arith.constant 0 : index
    %94 = vector.load %arg4[%c0_44, %c0_45, %c0_46] : memref<9x8x8xf32, #tpu.memory_space<vmem>>, vector<1x8x8xf32>
    %95 = vector.shape_cast %94 : vector<1x8x8xf32> to vector<8x8xf32>
    %cst_47 = arith.constant dense<0.000000e+00> : vector<8x256xf32>
    %96 = tpu.matmul %95, %93, %cst_47 {dimension_numbers = #tpu.dot_dimension_numbers<[1], [0], [0], [1], [0, 0, 1, 1], [], []>} : vector<8x8xf32>, vector<8x256xf32>, vector<8x256xf32> -> vector<8x256xf32>
    %97 = arith.addf %88, %96 : vector<8x256xf32>
    %98 = vector.extract_strided_slice %87 {offsets = [0, 1], sizes = [8, 256], strides = [1, 1]} : vector<8x290xf32> to vector<8x256xf32>
    %c1_48 = arith.constant 1 : index
    %c0_49 = arith.constant 0 : index
    %c0_50 = arith.constant 0 : index
    %99 = vector.load %arg4[%c1_48, %c0_49, %c0_50] : memref<9x8x8xf32, #tpu.memory_space<vmem>>, vector<1x8x8xf32>
    %100 = vector.shape_cast %99 : vector<1x8x8xf32> to vector<8x8xf32>
    %cst_51 = arith.constant dense<0.000000e+00> : vector<8x256xf32>
    %101 = tpu.matmul %100, %98, %cst_51 {dimension_numbers = #tpu.dot_dimension_numbers<[1], [0], [0], [1], [0, 0, 1, 1], [], []>} : vector<8x8xf32>, vector<8x256xf32>, vector<8x256xf32> -> vector<8x256xf32>
    %102 = arith.addf %97, %101 : vector<8x256xf32>
    %103 = vector.extract_strided_slice %87 {offsets = [0, 2], sizes = [8, 256], strides = [1, 1]} : vector<8x290xf32> to vector<8x256xf32>
    %cst_52 = arith.constant 0.000000e+00 : f32
    %104 = vector.shape_cast %8 : vector<1x256xi1> to vector<1x256xi1>
    %105 = vector.broadcast %104 : vector<1x256xi1> to vector<8x256xi1>
    %106 = vector.broadcast %cst_52 : f32 to vector<8x256xf32>
    %107 = arith.select %105, %103, %106 : vector<8x256xi1>, vector<8x256xf32>
    %c2_53 = arith.constant 2 : index
    %c0_54 = arith.constant 0 : index
    %c0_55 = arith.constant 0 : index
    %108 = vector.load %arg4[%c2_53, %c0_54, %c0_55] : memref<9x8x8xf32, #tpu.memory_space<vmem>>, vector<1x8x8xf32>
    %109 = vector.shape_cast %108 : vector<1x8x8xf32> to vector<8x8xf32>
    %cst_56 = arith.constant dense<0.000000e+00> : vector<8x256xf32>
    %110 = tpu.matmul %109, %107, %cst_56 {dimension_numbers = #tpu.dot_dimension_numbers<[1], [0], [0], [1], [0, 0, 1, 1], [], []>} : vector<8x8xf32>, vector<8x256xf32>, vector<8x256xf32> -> vector<8x256xf32>
    %111 = arith.addf %102, %110 : vector<8x256xf32>
    %112 = vector.extract_strided_slice %87 {offsets = [0, 16], sizes = [8, 256], strides = [1, 1]} : vector<8x290xf32> to vector<8x256xf32>
    %cst_57 = arith.constant 0.000000e+00 : f32
    %113 = vector.shape_cast %6 : vector<1x256xi1> to vector<1x256xi1>
    %114 = vector.broadcast %113 : vector<1x256xi1> to vector<8x256xi1>
    %115 = vector.broadcast %cst_57 : f32 to vector<8x256xf32>
    %116 = arith.select %114, %112, %115 : vector<8x256xi1>, vector<8x256xf32>
    %c3_58 = arith.constant 3 : index
    %c0_59 = arith.constant 0 : index
    %c0_60 = arith.constant 0 : index
    %117 = vector.load %arg4[%c3_58, %c0_59, %c0_60] : memref<9x8x8xf32, #tpu.memory_space<vmem>>, vector<1x8x8xf32>
    %118 = vector.shape_cast %117 : vector<1x8x8xf32> to vector<8x8xf32>
    %cst_61 = arith.constant dense<0.000000e+00> : vector<8x256xf32>
    %119 = tpu.matmul %118, %116, %cst_61 {dimension_numbers = #tpu.dot_dimension_numbers<[1], [0], [0], [1], [0, 0, 1, 1], [], []>} : vector<8x8xf32>, vector<8x256xf32>, vector<8x256xf32> -> vector<8x256xf32>
    %120 = arith.addf %111, %119 : vector<8x256xf32>
    %121 = vector.extract_strided_slice %87 {offsets = [0, 17], sizes = [8, 256], strides = [1, 1]} : vector<8x290xf32> to vector<8x256xf32>
    %c4_62 = arith.constant 4 : index
    %c0_63 = arith.constant 0 : index
    %c0_64 = arith.constant 0 : index
    %122 = vector.load %arg4[%c4_62, %c0_63, %c0_64] : memref<9x8x8xf32, #tpu.memory_space<vmem>>, vector<1x8x8xf32>
    %123 = vector.shape_cast %122 : vector<1x8x8xf32> to vector<8x8xf32>
    %cst_65 = arith.constant dense<0.000000e+00> : vector<8x256xf32>
    %124 = tpu.matmul %123, %121, %cst_65 {dimension_numbers = #tpu.dot_dimension_numbers<[1], [0], [0], [1], [0, 0, 1, 1], [], []>} : vector<8x8xf32>, vector<8x256xf32>, vector<8x256xf32> -> vector<8x256xf32>
    %125 = arith.addf %120, %124 : vector<8x256xf32>
    %126 = vector.extract_strided_slice %87 {offsets = [0, 18], sizes = [8, 256], strides = [1, 1]} : vector<8x290xf32> to vector<8x256xf32>
    %cst_66 = arith.constant 0.000000e+00 : f32
    %127 = vector.shape_cast %8 : vector<1x256xi1> to vector<1x256xi1>
    %128 = vector.broadcast %127 : vector<1x256xi1> to vector<8x256xi1>
    %129 = vector.broadcast %cst_66 : f32 to vector<8x256xf32>
    %130 = arith.select %128, %126, %129 : vector<8x256xi1>, vector<8x256xf32>
    %c5_67 = arith.constant 5 : index
    %c0_68 = arith.constant 0 : index
    %c0_69 = arith.constant 0 : index
    %131 = vector.load %arg4[%c5_67, %c0_68, %c0_69] : memref<9x8x8xf32, #tpu.memory_space<vmem>>, vector<1x8x8xf32>
    %132 = vector.shape_cast %131 : vector<1x8x8xf32> to vector<8x8xf32>
    %cst_70 = arith.constant dense<0.000000e+00> : vector<8x256xf32>
    %133 = tpu.matmul %132, %130, %cst_70 {dimension_numbers = #tpu.dot_dimension_numbers<[1], [0], [0], [1], [0, 0, 1, 1], [], []>} : vector<8x8xf32>, vector<8x256xf32>, vector<8x256xf32> -> vector<8x256xf32>
    %134 = arith.addf %125, %133 : vector<8x256xf32>
    %135 = vector.extract_strided_slice %87 {offsets = [0, 32], sizes = [8, 256], strides = [1, 1]} : vector<8x290xf32> to vector<8x256xf32>
    %cst_71 = arith.constant 0.000000e+00 : f32
    %136 = vector.shape_cast %6 : vector<1x256xi1> to vector<1x256xi1>
    %137 = vector.broadcast %136 : vector<1x256xi1> to vector<8x256xi1>
    %138 = vector.broadcast %cst_71 : f32 to vector<8x256xf32>
    %139 = arith.select %137, %135, %138 : vector<8x256xi1>, vector<8x256xf32>
    %c6_72 = arith.constant 6 : index
    %c0_73 = arith.constant 0 : index
    %c0_74 = arith.constant 0 : index
    %140 = vector.load %arg4[%c6_72, %c0_73, %c0_74] : memref<9x8x8xf32, #tpu.memory_space<vmem>>, vector<1x8x8xf32>
    %141 = vector.shape_cast %140 : vector<1x8x8xf32> to vector<8x8xf32>
    %cst_75 = arith.constant dense<0.000000e+00> : vector<8x256xf32>
    %142 = tpu.matmul %141, %139, %cst_75 {dimension_numbers = #tpu.dot_dimension_numbers<[1], [0], [0], [1], [0, 0, 1, 1], [], []>} : vector<8x8xf32>, vector<8x256xf32>, vector<8x256xf32> -> vector<8x256xf32>
    %143 = arith.addf %134, %142 : vector<8x256xf32>
    %144 = vector.extract_strided_slice %87 {offsets = [0, 33], sizes = [8, 256], strides = [1, 1]} : vector<8x290xf32> to vector<8x256xf32>
    %c7_76 = arith.constant 7 : index
    %c0_77 = arith.constant 0 : index
    %c0_78 = arith.constant 0 : index
    %145 = vector.load %arg4[%c7_76, %c0_77, %c0_78] : memref<9x8x8xf32, #tpu.memory_space<vmem>>, vector<1x8x8xf32>
    %146 = vector.shape_cast %145 : vector<1x8x8xf32> to vector<8x8xf32>
    %cst_79 = arith.constant dense<0.000000e+00> : vector<8x256xf32>
    %147 = tpu.matmul %146, %144, %cst_79 {dimension_numbers = #tpu.dot_dimension_numbers<[1], [0], [0], [1], [0, 0, 1, 1], [], []>} : vector<8x8xf32>, vector<8x256xf32>, vector<8x256xf32> -> vector<8x256xf32>
    %148 = arith.addf %143, %147 : vector<8x256xf32>
    %149 = vector.extract_strided_slice %87 {offsets = [0, 34], sizes = [8, 256], strides = [1, 1]} : vector<8x290xf32> to vector<8x256xf32>
    %cst_80 = arith.constant 0.000000e+00 : f32
    %150 = vector.shape_cast %8 : vector<1x256xi1> to vector<1x256xi1>
    %151 = vector.broadcast %150 : vector<1x256xi1> to vector<8x256xi1>
    %152 = vector.broadcast %cst_80 : f32 to vector<8x256xf32>
    %153 = arith.select %151, %149, %152 : vector<8x256xi1>, vector<8x256xf32>
    %c8_81 = arith.constant 8 : index
    %c0_82 = arith.constant 0 : index
    %c0_83 = arith.constant 0 : index
    %154 = vector.load %arg4[%c8_81, %c0_82, %c0_83] : memref<9x8x8xf32, #tpu.memory_space<vmem>>, vector<1x8x8xf32>
    %155 = vector.shape_cast %154 : vector<1x8x8xf32> to vector<8x8xf32>
    %cst_84 = arith.constant dense<0.000000e+00> : vector<8x256xf32>
    %156 = tpu.matmul %155, %153, %cst_84 {dimension_numbers = #tpu.dot_dimension_numbers<[1], [0], [0], [1], [0, 0, 1, 1], [], []>} : vector<8x8xf32>, vector<8x256xf32>, vector<8x256xf32> -> vector<8x256xf32>
    %157 = arith.addf %148, %156 : vector<8x256xf32>
    %c0_85 = arith.constant 0 : index
    %c0_86 = arith.constant 0 : index
    %158 = vector.load %arg5[%c0_85, %c0_86] : memref<8x1xf32, #tpu.memory_space<vmem>>, vector<8x1xf32>
    %159 = vector.broadcast %158 : vector<8x1xf32> to vector<8x256xf32>
    %160 = arith.addf %157, %159 : vector<8x256xf32>
    %cst_87 = arith.constant 0.000000e+00 : f32
    %161 = vector.broadcast %cst_87 : f32 to vector<8x256xf32>
    %162 = arith.maximumf %160, %161 : vector<8x256xf32>
    %cst_88 = arith.constant 0.000000e+00 : f32
    %163 = vector.broadcast %cst_88 : f32 to vector<8x17xf32>
    %164 = tpu.concatenate %163, %162, %163 in 1 : vector<8x17xf32>, vector<8x256xf32>, vector<8x17xf32> -> vector<8x290xf32>
    %cst_89 = arith.constant 0.000000e+00 : f32
    %165 = vector.broadcast %cst_89 : f32 to vector<2x256xf32>
    %166 = vector.extract_strided_slice %164 {offsets = [0, 0], sizes = [8, 256], strides = [1, 1]} : vector<8x290xf32> to vector<8x256xf32>
    %cst_90 = arith.constant 0.000000e+00 : f32
    %167 = vector.shape_cast %6 : vector<1x256xi1> to vector<1x256xi1>
    %168 = vector.broadcast %167 : vector<1x256xi1> to vector<8x256xi1>
    %169 = vector.broadcast %cst_90 : f32 to vector<8x256xf32>
    %170 = arith.select %168, %166, %169 : vector<8x256xi1>, vector<8x256xf32>
    %c0_91 = arith.constant 0 : index
    %c0_92 = arith.constant 0 : index
    %c0_93 = arith.constant 0 : index
    %171 = vector.load %arg6[%c0_91, %c0_92, %c0_93] : memref<9x2x8xf32, #tpu.memory_space<vmem>>, vector<1x2x8xf32>
    %172 = vector.shape_cast %171 : vector<1x2x8xf32> to vector<2x8xf32>
    %cst_94 = arith.constant dense<0.000000e+00> : vector<2x256xf32>
    %173 = tpu.matmul %172, %170, %cst_94 {dimension_numbers = #tpu.dot_dimension_numbers<[1], [0], [0], [1], [0, 0, 1, 1], [], []>} : vector<2x8xf32>, vector<8x256xf32>, vector<2x256xf32> -> vector<2x256xf32>
    %174 = arith.addf %165, %173 : vector<2x256xf32>
    %175 = vector.extract_strided_slice %164 {offsets = [0, 1], sizes = [8, 256], strides = [1, 1]} : vector<8x290xf32> to vector<8x256xf32>
    %c1_95 = arith.constant 1 : index
    %c0_96 = arith.constant 0 : index
    %c0_97 = arith.constant 0 : index
    %176 = vector.load %arg6[%c1_95, %c0_96, %c0_97] : memref<9x2x8xf32, #tpu.memory_space<vmem>>, vector<1x2x8xf32>
    %177 = vector.shape_cast %176 : vector<1x2x8xf32> to vector<2x8xf32>
    %cst_98 = arith.constant dense<0.000000e+00> : vector<2x256xf32>
    %178 = tpu.matmul %177, %175, %cst_98 {dimension_numbers = #tpu.dot_dimension_numbers<[1], [0], [0], [1], [0, 0, 1, 1], [], []>} : vector<2x8xf32>, vector<8x256xf32>, vector<2x256xf32> -> vector<2x256xf32>
    %179 = arith.addf %174, %178 : vector<2x256xf32>
    %180 = vector.extract_strided_slice %164 {offsets = [0, 2], sizes = [8, 256], strides = [1, 1]} : vector<8x290xf32> to vector<8x256xf32>
    %cst_99 = arith.constant 0.000000e+00 : f32
    %181 = vector.shape_cast %8 : vector<1x256xi1> to vector<1x256xi1>
    %182 = vector.broadcast %181 : vector<1x256xi1> to vector<8x256xi1>
    %183 = vector.broadcast %cst_99 : f32 to vector<8x256xf32>
    %184 = arith.select %182, %180, %183 : vector<8x256xi1>, vector<8x256xf32>
    %c2_100 = arith.constant 2 : index
    %c0_101 = arith.constant 0 : index
    %c0_102 = arith.constant 0 : index
    %185 = vector.load %arg6[%c2_100, %c0_101, %c0_102] : memref<9x2x8xf32, #tpu.memory_space<vmem>>, vector<1x2x8xf32>
    %186 = vector.shape_cast %185 : vector<1x2x8xf32> to vector<2x8xf32>
    %cst_103 = arith.constant dense<0.000000e+00> : vector<2x256xf32>
    %187 = tpu.matmul %186, %184, %cst_103 {dimension_numbers = #tpu.dot_dimension_numbers<[1], [0], [0], [1], [0, 0, 1, 1], [], []>} : vector<2x8xf32>, vector<8x256xf32>, vector<2x256xf32> -> vector<2x256xf32>
    %188 = arith.addf %179, %187 : vector<2x256xf32>
    %189 = vector.extract_strided_slice %164 {offsets = [0, 16], sizes = [8, 256], strides = [1, 1]} : vector<8x290xf32> to vector<8x256xf32>
    %cst_104 = arith.constant 0.000000e+00 : f32
    %190 = vector.shape_cast %6 : vector<1x256xi1> to vector<1x256xi1>
    %191 = vector.broadcast %190 : vector<1x256xi1> to vector<8x256xi1>
    %192 = vector.broadcast %cst_104 : f32 to vector<8x256xf32>
    %193 = arith.select %191, %189, %192 : vector<8x256xi1>, vector<8x256xf32>
    %c3_105 = arith.constant 3 : index
    %c0_106 = arith.constant 0 : index
    %c0_107 = arith.constant 0 : index
    %194 = vector.load %arg6[%c3_105, %c0_106, %c0_107] : memref<9x2x8xf32, #tpu.memory_space<vmem>>, vector<1x2x8xf32>
    %195 = vector.shape_cast %194 : vector<1x2x8xf32> to vector<2x8xf32>
    %cst_108 = arith.constant dense<0.000000e+00> : vector<2x256xf32>
    %196 = tpu.matmul %195, %193, %cst_108 {dimension_numbers = #tpu.dot_dimension_numbers<[1], [0], [0], [1], [0, 0, 1, 1], [], []>} : vector<2x8xf32>, vector<8x256xf32>, vector<2x256xf32> -> vector<2x256xf32>
    %197 = arith.addf %188, %196 : vector<2x256xf32>
    %198 = vector.extract_strided_slice %164 {offsets = [0, 17], sizes = [8, 256], strides = [1, 1]} : vector<8x290xf32> to vector<8x256xf32>
    %c4_109 = arith.constant 4 : index
    %c0_110 = arith.constant 0 : index
    %c0_111 = arith.constant 0 : index
    %199 = vector.load %arg6[%c4_109, %c0_110, %c0_111] : memref<9x2x8xf32, #tpu.memory_space<vmem>>, vector<1x2x8xf32>
    %200 = vector.shape_cast %199 : vector<1x2x8xf32> to vector<2x8xf32>
    %cst_112 = arith.constant dense<0.000000e+00> : vector<2x256xf32>
    %201 = tpu.matmul %200, %198, %cst_112 {dimension_numbers = #tpu.dot_dimension_numbers<[1], [0], [0], [1], [0, 0, 1, 1], [], []>} : vector<2x8xf32>, vector<8x256xf32>, vector<2x256xf32> -> vector<2x256xf32>
    %202 = arith.addf %197, %201 : vector<2x256xf32>
    %203 = vector.extract_strided_slice %164 {offsets = [0, 18], sizes = [8, 256], strides = [1, 1]} : vector<8x290xf32> to vector<8x256xf32>
    %cst_113 = arith.constant 0.000000e+00 : f32
    %204 = vector.shape_cast %8 : vector<1x256xi1> to vector<1x256xi1>
    %205 = vector.broadcast %204 : vector<1x256xi1> to vector<8x256xi1>
    %206 = vector.broadcast %cst_113 : f32 to vector<8x256xf32>
    %207 = arith.select %205, %203, %206 : vector<8x256xi1>, vector<8x256xf32>
    %c5_114 = arith.constant 5 : index
    %c0_115 = arith.constant 0 : index
    %c0_116 = arith.constant 0 : index
    %208 = vector.load %arg6[%c5_114, %c0_115, %c0_116] : memref<9x2x8xf32, #tpu.memory_space<vmem>>, vector<1x2x8xf32>
    %209 = vector.shape_cast %208 : vector<1x2x8xf32> to vector<2x8xf32>
    %cst_117 = arith.constant dense<0.000000e+00> : vector<2x256xf32>
    %210 = tpu.matmul %209, %207, %cst_117 {dimension_numbers = #tpu.dot_dimension_numbers<[1], [0], [0], [1], [0, 0, 1, 1], [], []>} : vector<2x8xf32>, vector<8x256xf32>, vector<2x256xf32> -> vector<2x256xf32>
    %211 = arith.addf %202, %210 : vector<2x256xf32>
    %212 = vector.extract_strided_slice %164 {offsets = [0, 32], sizes = [8, 256], strides = [1, 1]} : vector<8x290xf32> to vector<8x256xf32>
    %cst_118 = arith.constant 0.000000e+00 : f32
    %213 = vector.shape_cast %6 : vector<1x256xi1> to vector<1x256xi1>
    %214 = vector.broadcast %213 : vector<1x256xi1> to vector<8x256xi1>
    %215 = vector.broadcast %cst_118 : f32 to vector<8x256xf32>
    %216 = arith.select %214, %212, %215 : vector<8x256xi1>, vector<8x256xf32>
    %c6_119 = arith.constant 6 : index
    %c0_120 = arith.constant 0 : index
    %c0_121 = arith.constant 0 : index
    %217 = vector.load %arg6[%c6_119, %c0_120, %c0_121] : memref<9x2x8xf32, #tpu.memory_space<vmem>>, vector<1x2x8xf32>
    %218 = vector.shape_cast %217 : vector<1x2x8xf32> to vector<2x8xf32>
    %cst_122 = arith.constant dense<0.000000e+00> : vector<2x256xf32>
    %219 = tpu.matmul %218, %216, %cst_122 {dimension_numbers = #tpu.dot_dimension_numbers<[1], [0], [0], [1], [0, 0, 1, 1], [], []>} : vector<2x8xf32>, vector<8x256xf32>, vector<2x256xf32> -> vector<2x256xf32>
    %220 = arith.addf %211, %219 : vector<2x256xf32>
    %221 = vector.extract_strided_slice %164 {offsets = [0, 33], sizes = [8, 256], strides = [1, 1]} : vector<8x290xf32> to vector<8x256xf32>
    %c7_123 = arith.constant 7 : index
    %c0_124 = arith.constant 0 : index
    %c0_125 = arith.constant 0 : index
    %222 = vector.load %arg6[%c7_123, %c0_124, %c0_125] : memref<9x2x8xf32, #tpu.memory_space<vmem>>, vector<1x2x8xf32>
    %223 = vector.shape_cast %222 : vector<1x2x8xf32> to vector<2x8xf32>
    %cst_126 = arith.constant dense<0.000000e+00> : vector<2x256xf32>
    %224 = tpu.matmul %223, %221, %cst_126 {dimension_numbers = #tpu.dot_dimension_numbers<[1], [0], [0], [1], [0, 0, 1, 1], [], []>} : vector<2x8xf32>, vector<8x256xf32>, vector<2x256xf32> -> vector<2x256xf32>
    %225 = arith.addf %220, %224 : vector<2x256xf32>
    %226 = vector.extract_strided_slice %164 {offsets = [0, 34], sizes = [8, 256], strides = [1, 1]} : vector<8x290xf32> to vector<8x256xf32>
    %cst_127 = arith.constant 0.000000e+00 : f32
    %227 = vector.shape_cast %8 : vector<1x256xi1> to vector<1x256xi1>
    %228 = vector.broadcast %227 : vector<1x256xi1> to vector<8x256xi1>
    %229 = vector.broadcast %cst_127 : f32 to vector<8x256xf32>
    %230 = arith.select %228, %226, %229 : vector<8x256xi1>, vector<8x256xf32>
    %c8_128 = arith.constant 8 : index
    %c0_129 = arith.constant 0 : index
    %c0_130 = arith.constant 0 : index
    %231 = vector.load %arg6[%c8_128, %c0_129, %c0_130] : memref<9x2x8xf32, #tpu.memory_space<vmem>>, vector<1x2x8xf32>
    %232 = vector.shape_cast %231 : vector<1x2x8xf32> to vector<2x8xf32>
    %cst_131 = arith.constant dense<0.000000e+00> : vector<2x256xf32>
    %233 = tpu.matmul %232, %230, %cst_131 {dimension_numbers = #tpu.dot_dimension_numbers<[1], [0], [0], [1], [0, 0, 1, 1], [], []>} : vector<2x8xf32>, vector<8x256xf32>, vector<2x256xf32> -> vector<2x256xf32>
    %234 = arith.addf %225, %233 : vector<2x256xf32>
    %c0_132 = arith.constant 0 : index
    %c0_133 = arith.constant 0 : index
    %235 = vector.load %arg7[%c0_132, %c0_133] : memref<2x1xf32, #tpu.memory_space<vmem>>, vector<2x1xf32>
    %236 = vector.broadcast %235 : vector<2x1xf32> to vector<2x256xf32>
    %237 = arith.addf %234, %236 : vector<2x256xf32>
    %c0_134 = arith.constant 0 : index
    %c0_135 = arith.constant 0 : index
    %c0_136 = arith.constant 0 : index
    %238 = vector.load %arg8[%c0_134, %c0_135, %c0_136] : memref<1x2x256xf32, #tpu.memory_space<vmem>>, vector<1x2x256xf32>
    %239 = vector.shape_cast %238 : vector<1x2x256xf32> to vector<2x256xf32>
    %240 = vector.shape_cast %237 : vector<2x256xf32> to vector<1x2x256xf32>
    tpu.vector_store %arg8[%c0_134, %c0_135, %c0_136], %240 {strides = array<i32>} : memref<1x2x256xf32, #tpu.memory_space<vmem>>, vector<1x2x256xf32>,
    return
  }
  func.func @transform_0(%arg0: i32) -> (i32, i32, i32) {
    %c0_i32 = arith.constant 0 : i32
    %c0_i32_0 = arith.constant 0 : i32
    %c0_i32_1 = arith.constant 0 : i32
    return %arg0, %c0_i32, %c0_i32_0 : i32, i32, i32
  }
  func.func @transform_1(%arg0: i32) -> (i32, i32, i32) {
    %c0_i32 = arith.constant 0 : i32
    %c0_i32_0 = arith.constant 0 : i32
    %c0_i32_1 = arith.constant 0 : i32
    %c0_i32_2 = arith.constant 0 : i32
    return %c0_i32, %c0_i32_0, %c0_i32_1 : i32, i32, i32
  }
  func.func @transform_2(%arg0: i32) -> (i32, i32) {
    %c0_i32 = arith.constant 0 : i32
    %c0_i32_0 = arith.constant 0 : i32
    %c0_i32_1 = arith.constant 0 : i32
    return %c0_i32, %c0_i32_0 : i32, i32
  }
  func.func @transform_3(%arg0: i32) -> (i32, i32, i32) {
    %c0_i32 = arith.constant 0 : i32
    %c0_i32_0 = arith.constant 0 : i32
    %c0_i32_1 = arith.constant 0 : i32
    %c0_i32_2 = arith.constant 0 : i32
    return %c0_i32, %c0_i32_0, %c0_i32_1 : i32, i32, i32
  }
  func.func @transform_4(%arg0: i32) -> (i32, i32) {
    %c0_i32 = arith.constant 0 : i32
    %c0_i32_0 = arith.constant 0 : i32
    %c0_i32_1 = arith.constant 0 : i32
    return %c0_i32, %c0_i32_0 : i32, i32
  }
  func.func @transform_5(%arg0: i32) -> (i32, i32, i32) {
    %c0_i32 = arith.constant 0 : i32
    %c0_i32_0 = arith.constant 0 : i32
    %c0_i32_1 = arith.constant 0 : i32
    %c0_i32_2 = arith.constant 0 : i32
    return %c0_i32, %c0_i32_0, %c0_i32_1 : i32, i32, i32
  }
  func.func @transform_6(%arg0: i32) -> (i32, i32) {
    %c0_i32 = arith.constant 0 : i32
    %c0_i32_0 = arith.constant 0 : i32
    %c0_i32_1 = arith.constant 0 : i32
    return %c0_i32, %c0_i32_0 : i32, i32
  }
  func.func @transform_7(%arg0: i32) -> (i32, i32, i32) {
    %c0_i32 = arith.constant 0 : i32
    %c0_i32_0 = arith.constant 0 : i32
    %c0_i32_1 = arith.constant 0 : i32
    return %arg0, %c0_i32, %c0_i32_0 : i32, i32, i32
  }
}

</mosaic_0001>

<bundles_post_ra>
// kernel: tpu_custom_call.1
= control target key start
LH: loop header
LB: loop body
LE: loop exit
PB: predicated region body
PF: predicated region fallthrough
CT: control target
= control target key end

     0   :  { %12 = vsyncpa [#allocation3], 0  ;;  %s3707_s0 = inlined_call_operand.vmem [shape: f32[2,3,256], index: 0, kind: input, shape index: {}]   ;;  %s3708_s1 = inlined_call_operand.vmem [shape: f32[9,8,3], index: 1, kind: input, shape index: {}]   ;;  %s3709_s2 = inlined_call_operand.vmem [shape: f32[8,1], index: 2, kind: input, shape index: {}]   ;;  %s3710_s3 = inlined_call_operand.vmem [shape: f32[9,8,8], index: 3, kind: input, shape index: {}]   ;;  %s3711_s4 = inlined_call_operand.vmem [shape: f32[8,1], index: 4, kind: input, shape index: {}]   ;;  %s3712_s5 = inlined_call_operand.vmem [shape: f32[9,2,8], index: 5, kind: input, shape index: {}]   ;;  %s3713_s6 = inlined_call_operand.vmem [shape: f32[2,1], index: 6, kind: input, shape index: {}]   ;;  %s3714_s7 = inlined_call_operand.hbm [shape: f32[2,2,256], index: 7, kind: output, shape index: {}]  }
   0x1   :  { %14 = vsyncpa [#allocation3 + $0x1], 0  ;;  %s3197_s24 = smov 0   ;;  %s3199_s25 = smov 0  }
   0x2   :  { %s3201_s26 = smov 0   ;;  %s3203_s27 = smov 0  }
   0x3 LB: > { %s3218_s28 = sadd.s32 4294967295, %s3143_s27   ;;  %s2872_s29 = sadd.s32 4294967294, %s3143_s27   ;;  %s3143_s27 = sphi %s3203_s27, %s3728_s27   ;;  %s3139_s26 = sphi %s3201_s26, %s3727_s26   ;;  %s3135_s25 = sphi %s3199_s25, %s3726_s25   ;;  %s3131_s24 = sphi %s3197_s24, %s3725_s24  }
   0x4   : > { %s3222_s30 = sadd.s32 1, %s3143_s27   ;;  %s179_s8 = sadd.s32 1, %s3139_s26 }
   0x5   : > { %s176_s9 = ssub.s32 %s3143_s27, %s3222_s30  ;;  %p189_p0 = scmp.ne.s32.totalorder %s3139_s26, %s3135_s25 }
   0x6   : > { %p177_p1 = scmp.eq.s32.totalorder %s176_s9, 0  ;;  %p190_p2 = scmp.eq.s32.totalorder %s3218_s28, 1 }
   0x7   : > { %p195_p3 = scmp.ne.s32.totalorder %s3135_s25, %s3131_s24  ;;  %p196_p4 = scmp.eq.s32.totalorder %s2872_s29, 1 }
   0x8   : > { %s3233_s10 = scalar_select %p177_p1, %s3139_s26, %s179_s8  }
   0x9   : > { %p3235_p5 = por %p190_p2, %p189_p0  ;;  %p3239_p6 = por %p196_p4, %p195_p3 }
   0xa   : > { %p2875_p7 = scmp.ge.s32.totalorder %s3143_s27, 1  ;;  %p240_p8 = scmp.lt.s32.totalorder %s3143_s27, 3 }
   0xc   : > { %p241_p9 = pnand %p2875_p7, %p240_p8 }
   0xd   : > { %p272_p10 = scmp.lt.s32.totalorder (!%p241_p9), %s3218_s28, 1  ;;  %s3145_s18 = smov (!%p241_p9), 17   ;;  %vm293_vm0 = vcmask (!%p241_p9), 138240   ;;  %v3150_v4 = vmov (!%p241_p9), 0.0   ;;  %v3155_v8 = vmov (!%p241_p9), 0   ;;  %v1151_v9 = vld [vmem:[%s3709_s2] sm:$0xff] (!%p241_p9)  ;;  %v278_v14 = vlaneseq (!%p241_p9) }
   0xe   : > { %244 = sbr.rel (%p241_p9) target bundleno = 1581 (0x62d), region = 48  ;;  %s3146_s19 = smov (!%p241_p9), 110   ;;  %760 = vmatprep.mubr.f32.mxu0 (!%p241_p9), %v3150_v4  ;;  %393 = vmatprep.mubr.f32.mxu1 (!%p241_p9), %v3150_v4  ;;  %vm324_vm1 = vcmask (!%p241_p9), 1042432   ;;  %vm686_vm2 = vcmask (!%p241_p9), 908288   ;;  %vm320_vm3 = vcmask (!%p241_p9), 23552   ;;  %v2894_v26 = vld [vmem:[%s3708_s1 + $0x20] sm:$0xff] (!%p241_p9) }
   0xf   : > { %s3147_s20 = smov (!%p241_p9), 111   ;;  %s3148_s21 = smov (!%p241_p9), 96   ;;  %3078 = vset.pattern.permute.xlu0 (!%p241_p9), %v3155_v8  ;;  %3079 = vset.pattern.permute.xlu1 (!%p241_p9), %v3155_v8  ;;  %v279_v17 = vand.u32 (!%p241_p9), 127, %v278_v14  ;;  %vm775_vm4 = vcmask (!%p241_p9), 900096   ;;  %vm317_vm7 = vcmask (!%p241_p9), 1039360   ;;  %v2879_v42 = vld [vmem:[%s3708_s1 + $0x8] sm:$0xff] (!%p241_p9) }
  0x10   : > { %s3149_s22 = smov (!%p241_p9), 127   ;;  %s3151_s23 = smov (!%p241_p9), 95   ;;  %vm872_vm10 = vcmask (!%p241_p9), 785408   ;;  %v2898_v43 = vld [vmem:[%s3708_s1 + $0x28] sm:$0xff] (!%p241_p9)  ;;  %vm490_vm11 = vcmask (!%p241_p9), 1031168   ;;  %v306_v56 = vld [vmem:[%s3708_s1] sm:$0xff] (!%p241_p9) }
  0x11   : > { %s3152_s29 = smov (!%p241_p9), 126   ;;  %s3153_s8 = smov (!%p241_p9), 112   ;;  %v280_v20 = vadd.s32 (!%p241_p9), 128, %v279_v17  ;;  %v281_v24 = vand.u32 (!%p241_p9), 15, %v279_v17  ;;  %vm971_vm12 = vcmask (!%p241_p9), 777216   ;;  %v2902_v58 = vld [vmem:[%s3708_s1 + $0x30] sm:$0xff] (!%p241_p9) }
  0x12   : > { %s3154_s9 = smov (!%p241_p9), 94   ;;  %vm587_vm13 = vcmask (!%p241_p9), 916480   ;;  %vm1060_vm14 = vcmask (!%p241_p9), 769024   ;;  %v2906_v8 = vld [vmem:[%s3708_s1 + $0x38] sm:$0xff] (!%p241_p9)  ;;  %vm1190_vm15 = vcmask (!%p241_p9), 64512  }
  0x13   : > { %v282_v25 = vand.u32 (!%p241_p9), 15, %v280_v20  ;;  %vm3313_vm5 = vcmp.ne.s32.totalorder (!%p241_p9), %v281_v24, 15  ;;  %vm3337_vm9 = vcmp.ne.s32.totalorder (!%p241_p9), %v281_v24, 0  ;;  %v2890_v14 = vld [vmem:[%s3708_s1 + $0x18] sm:$0xff] (!%p241_p9)  ;;  %v2962_v38 = vld [vmem:[%s3712_s5 + $0xc] sm:$0x3] (!%p241_p9) }
  0x14   : > { %v2968_v29 = vld [vmem:[%s3712_s5 + $0x10] sm:$0x3] (!%p241_p9) }
  0x15   : > { %s273_s13 = scalar_select %p272_p10, %s3218_s28, 1  ;;  %vm3317_vm6 = vcmp.ne.s32.totalorder %v282_v25, 15  ;;  %vm3331_vm8 = vcmp.ne.s32.totalorder %v282_v25, 0 }
  0x17   : > { %s2978_s14 = sshll.u32 %s273_s13, 3 }
  0x18   : > { %s276_s17 = scalar_lea.vmem %s3707_s0, %s2978_s14 }
  0x19   : > { %v277_v0 = vld [vmem:[%s276_s17] sm:$0x77] }
  0x1a   : > { %289 = vrot.lane.b32.xlu0 %v277_v0, %s3145_s18  ;;  %v288_v1 = vcombine.high %v277_v0, %v277_v0 }
  0x1e   : > { %291 = vrot.lane.b32.xlu0 %v288_v1, %s3145_s18 }
  0x8c   : > { %v290_v2 = vpop.permute.xlu0 %289 }
  0x8d   : > { %v3253_v3 = vsel %vm293_vm0, 0.0, %v290_v2 }
  0x8e   : > { %769 = vrot.lane.b32.xlu1 %v3253_v3, %s3146_s19  ;;  %680 = vrot.lane.b32.xlu0 %v3253_v3, %s3147_s20  ;;  %v304_v47 = vsel %vm3337_vm9, %v3253_v3, 0.0 }
  0x90   : > { %v292_v5 = vpop.permute.xlu0 %291 }
  0x91   : > { %v299_v6 = vsel %vm293_vm0, %v292_v5, 0.0  ;;  %v3271_v7 = vsel %vm293_vm0, %v290_v2, %v292_v5  ;;  %v2886_v5 = vld [vmem:[%s3708_s1 + $0x10] sm:$0xff] }
  0x92   : > { %866 = vrot.lane.b32.xlu1 %v3253_v3, %s3148_s21  ;;  %311 = vrot.lane.b32.xlu0 %v3253_v3, %s3149_s22  ;;  %v305_v44 = vsel %vm3331_vm8, %v3271_v7, 0.0 }
  0x96   : > { %965 = vrot.lane.b32.xlu1 %v3253_v3, %s3151_s23  ;;  %484 = vrot.lane.b32.xlu0 %v3253_v3, %s3152_s29 }
  0x9a   : > { %773 = vrot.lane.b32.xlu0 %v299_v6, %s3146_s19  ;;  %682 = vrot.lane.b32.xlu1 %v3271_v7, %s3147_s20 }
  0x9e   : > { %315 = vrot.lane.b32.xlu0 %v299_v6, %s3149_s22  ;;  %684 = vrot.lane.b32.xlu1 %v299_v6, %s3147_s20 }
  0xa2   : > { %870 = vrot.lane.b32.xlu0 %v299_v6, %s3148_s21  ;;  %771 = vrot.lane.b32.xlu1 %v3271_v7, %s3146_s19 }
  0xa6   : > { %486 = vrot.lane.b32.xlu0 %v3271_v7, %s3152_s29  ;;  %313 = vrot.lane.b32.xlu1 %v3271_v7, %s3149_s22 }
  0xaa   : > { %969 = vrot.lane.b32.xlu0 %v299_v6, %s3151_s23  ;;  %868 = vrot.lane.b32.xlu1 %v3271_v7, %s3148_s21 }
  0xae   : > { %583 = vrot.lane.b32.xlu0 %v3271_v7, %s3153_s8  ;;  %488 = vrot.lane.b32.xlu1 %v299_v6, %s3152_s29 }
  0xb2   : > { %1056 = vrot.lane.b32.xlu0 %v3271_v7, %s3154_s9  ;;  %967 = vrot.lane.b32.xlu1 %v3271_v7, %s3151_s23 }
  0xb6   : > { %581 = vrot.lane.b32.xlu0 %v3253_v3, %s3153_s8  ;;  %585 = vrot.lane.b32.xlu1 %v299_v6, %s3153_s8 }
  0xba   : > { %1058 = vrot.lane.b32.xlu1 %v299_v6, %s3154_s9  ;;  %1154 = vperm.xlu0 %3078, %v1151_v9  }
  0xbe   : > { %1054 = vrot.lane.b32.xlu1 %v3253_v3, %s3154_s9 }
 0x100   : > { %v770_v10 = vpop.permute.xlu1 %769  ;;  %v681_v11 = vpop.permute.xlu0 %680 }
 0x104   : > { %v867_v12 = vpop.permute.xlu1 %866  ;;  %v312_v13 = vpop.permute.xlu0 %311 }
 0x108   : > { %v3304_v15 = vpop.permute.xlu1 %965  ;;  %v485_v16 = vpop.permute.xlu0 %484 }
 0x10c   : > { %v683_v18 = vpop.permute.xlu1 %682  ;;  %v774_v19 = vpop.permute.xlu0 %773 }
 0x10d   : > { %v687_v27 = vsel %vm686_vm2, %v681_v11, %v683_v18 }
 0x110   : > { %v685_v21 = vpop.permute.xlu1 %684  ;;  %v316_v22 = vpop.permute.xlu0 %315 }
 0x111   : > { %v688_v23 = vsel %vm686_vm2, %v683_v18, %v685_v21 }
 0x112   : > { %2895 = vmatprep.subr.msk.mxu0 %vm324_vm1, %v688_v23 }
 0x113   : > { %2896 = vmatpush1.msk.msra.mxu0 %vm324_vm1, %v687_v27 }
 0x114   : > { %v772_v30 = vpop.permute.xlu1 %771  ;;  %2897 = vmatmul.mubr.msk.f32.vlgmr.msra.gmra.mrb[0].mxu0 %vm320_vm3, %v2894_v26  ;;  %v871_v31 = vpop.permute.xlu0 %870 }
 0x115   : > { %v776_v32 = vsel %vm775_vm4, %v770_v10, %v772_v30  ;;  %v777_v33 = vsel %vm775_vm4, %v772_v30, %v774_v19  ;;  %857 = vmatprep.mubr.f32.mxu0 %v3150_v4 }
 0x116   : > { %v780_v34 = vsel %vm3313_vm5, %v776_v32, 0.0  ;;  %v781_v35 = vsel %vm3317_vm6, %v777_v33, 0.0 }
 0x117   : > { %2899 = vmatprep.subr.msk.mxu0 %vm324_vm1, %v781_v35  ;;  %v1965_v35 = vld [vmem:[%s3711_s4] sm:$0xff] }
 0x118   : > { %v314_v36 = vpop.permute.xlu1 %313  ;;  %2900 = vmatpush1.msk.msra.mxu0 %vm324_vm1, %v780_v34  ;;  %v487_v37 = vpop.permute.xlu0 %486 }
 0x119   : > { %v319_v39 = vsel %vm317_vm7, %v314_v36, %v316_v22  ;;  %v318_v40 = vsel %vm317_vm7, %v312_v13, %v314_v36  ;;  %v491_v54 = vsel %vm490_vm11, %v485_v16, %v487_v37  ;;  %v2910_v16 = vld [vmem:[%s3708_s1 + $0x40] sm:$0xff] }
 0x11a   : > { %2880 = vmatprep.subr.msk.mxu1 %vm324_vm1, %v319_v39  ;;  %v495_v59 = vsel %vm3313_vm5, %v491_v54, 0.0 }
 0x11b   : > { %2881 = vmatpush1.msk.msra.mxu1 %vm324_vm1, %v318_v40 }
 0x11c   : > { %v869_v45 = vpop.permute.xlu1 %868  ;;  %2882 = vmatmul.mubr.msk.f32.vlgmr.msra.gmra.mrb[0].mxu1 %vm320_vm3, %v2879_v42  ;;  %2883 = vmatprep.subr.msk.mxu1 %vm324_vm1, %v305_v44  ;;  %v970_v46 = vpop.permute.xlu0 %969 }
 0x11d   : > { %v873_v48 = vsel %vm872_vm10, %v867_v12, %v869_v45  ;;  %v874_v49 = vsel %vm872_vm10, %v869_v45, %v871_v31  ;;  %2901 = vmatmul.mubr.msk.f32.vlgmr.msra.gmra.mrb[0].mxu0 %vm320_vm3, %v2898_v43  ;;  %2884 = vmatpush1.msk.msra.mxu1 %vm324_vm1, %v304_v47  ;;  %v2914_v43 = vld [vmem:[%s3710_s3 + $0x8] sm:$0xff] }
 0x11e   : > { %v877_v50 = vsel %vm3337_vm9, %v873_v48, 0.0  ;;  %v878_v51 = vsel %vm3331_vm8, %v874_v49, 0.0  ;;  %473 = vmatprep.mubr.f32.mxu1 %v3150_v4  ;;  %954 = vmatprep.mubr.f32.mxu0 %v3150_v4 }
 0x11f   : > { %2903 = vmatprep.subr.msk.mxu0 %vm324_vm1, %v878_v51 }
 0x120   : > { %v489_v52 = vpop.permute.xlu1 %488  ;;  %2904 = vmatpush1.msk.msra.mxu0 %vm324_vm1, %v877_v50  ;;  %v584_v53 = vpop.permute.xlu0 %583  ;;  %v1175_v50 = vld [vmem:[%s3710_s3] sm:$0xff] }
 0x121   : > { %v492_v55 = vsel %vm490_vm11, %v487_v37, %v489_v52 }
 0x122   : > { %v496_v57 = vsel %vm3317_vm6, %v492_v55, 0.0 }
 0x123   : > { %2887 = vmatprep.subr.msk.mxu1 %vm324_vm1, %v496_v57 }
 0x124   : > { %v968_v60 = vpop.permute.xlu1 %967  ;;  %2885 = vmatmul.mubr.msk.f32.vlgmr.msra.gmra.mrb[0].mxu1 %vm320_vm3, %v306_v56  ;;  %v1057_v61 = vpop.permute.xlu0 %1056  ;;  %v2919_v56 = vld [vmem:[%s3710_s3 + $0x10] sm:$0xff] }
 0x125   : > { %v972_v62 = vsel %vm971_vm12, %v3304_v15, %v968_v60  ;;  %v973_v63 = vsel %vm971_vm12, %v968_v60, %v970_v46  ;;  %2888 = vmatpush1.msk.msra.mxu1 %vm324_vm1, %v495_v59  ;;  %2905 = vmatmul.mubr.msk.f32.vlgmr.msra.gmra.mrb[0].mxu0 %vm320_vm3, %v2902_v58 }
 0x126   : > { %2907 = vmatprep.subr.msk.mxu0 %vm324_vm1, %v973_v63  ;;  %572 = vmatprep.mubr.f32.mxu1 %v3150_v4 }
 0x127   : > { %2908 = vmatpush1.msk.msra.mxu0 %vm324_vm1, %v972_v62  ;;  %1045 = vmatprep.mubr.f32.mxu0 %v3150_v4  ;;  %v2923_v62 = vld [vmem:[%s3710_s3 + $0x18] sm:$0xff] }
 0x128   : > { %v586_v0 = vpop.permute.xlu1 %585  ;;  %v582_v1 = vpop.permute.xlu0 %581 }
 0x129   : > { %v589_v2 = vsel %vm587_vm13, %v584_v53, %v586_v0  ;;  %v588_v3 = vsel %vm587_vm13, %v582_v1, %v584_v53 }
 0x12a   : > { %v593_v6 = vsel %vm3331_vm8, %v589_v2, 0.0  ;;  %v592_v7 = vsel %vm3337_vm9, %v588_v3, 0.0 }
 0x12b   : > { %2891 = vmatprep.subr.msk.mxu1 %vm324_vm1, %v593_v6 }
 0x12c   : > { %v1059_v9 = vpop.permute.xlu1 %1058  ;;  %2889 = vmatmul.mubr.msk.f32.vlgmr.msra.gmra.mrb[0].mxu1 %vm320_vm3, %v2886_v5  ;;  %v2927_v5 = vld [vmem:[%s3710_s3 + $0x20] sm:$0xff] }
 0x12d   : > { %v1062_v10 = vsel %vm1060_vm14, %v1057_v61, %v1059_v9  ;;  %2892 = vmatpush1.msk.msra.mxu1 %vm324_vm1, %v592_v7  ;;  %2909 = vmatmul.mubr.msk.f32.vlgmr.msra.gmra.mrb[0].mxu0 %vm320_vm3, %v2906_v8 }
 0x12e   : > { %v1066_v11 = vsel %vm3317_vm6, %v1062_v10, 0.0  ;;  %669 = vmatprep.mubr.f32.mxu1 %v3150_v4  ;;  %1142 = vmatprep.mubr.f32.mxu0 %v3150_v4  ;;  %v2929_v10 = vld [vmem:[%s3710_s3 + $0x28] sm:$0xff] }
 0x12f   : > { %2911 = vmatprep.subr.msk.mxu0 %vm324_vm1, %v1066_v11 }
 0x130   : > { %v1055_v12 = vpop.permute.xlu1 %1054 }
 0x131   : > { %v1061_v13 = vsel %vm1060_vm14, %v1055_v12, %v1057_v61 }
 0x132   : > { %v1065_v15 = vsel %vm3313_vm5, %v1061_v13, 0.0 }
 0x133   : > { %2912 = vmatpush1.msk.msra.mxu0 %vm324_vm1, %v1065_v15  ;;  %v2933_v15 = vld [vmem:[%s3710_s3 + $0x30] sm:$0xff] }
 0x134   : > { %2893 = vmatmul.mubr.msk.f32.vlgmr.msra.gmra.mrb[0].mxu1 %vm320_vm3, %v2890_v14 }
 0x135   : > { %2913 = vmatmul.mubr.msk.f32.vlgmr.msra.gmra.mrb[0].mxu0 %vm320_vm3, %v2910_v16  ;;  %1258 = vmatprep.mubr.f32.mxu1 %v3150_v4 }
 0x136   : > { %2071 = vmatprep.mubr.f32.mxu0 %v3150_v4 }
 0x139   : > { %v1155_v18 = vpop.permute.xlu0 %1154 }
 0x207   : > { %v671_v17 = vpop.f32.mrb[0].mxu1 }
 0x208   : > { %v1144_v19 = vpop.f32.mrb[0].mxu0  ;;  %v673_v20 = vpop.f32.mrb[1].mxu1 }
 0x209   : > { %v2980_v21 = vadd.f32 %v1144_v19, %v671_v17  ;;  %v1146_v22 = vpop.f32.mrb[1].mxu0 }
 0x20a   : > { %v2981_v23 = vadd.f32 %v1146_v22, %v673_v20 }
 0x20b   : > { %v1157_v24 = vadd.f32 %v2980_v21, %v1155_v18  ;;  %v2937_v21 = vld [vmem:[%s3710_s3 + $0x38] sm:$0xff] }
 0x20c   : > { %v1158_v25 = vadd.f32 %v2981_v23, %v1155_v18  ;;  %v2939_v23 = vld [vmem:[%s3710_s3 + $0x40] sm:$0xff] }
 0x20d   : > { %v1159_v26 = vmax.f32 %v1157_v24, 0.0 }
 0x20e   : > { %v1160_v27 = vmax.f32 %v1158_v25, 0.0 }
 0x20f   : > { %1163 = vrot.lane.b32.xlu1 %v1159_v26, %s3145_s18 }
 0x213   : > { %1165 = vrot.lane.b32.xlu1 %v1160_v27, %s3145_s18 }
 0x281   : > { %v1164_v30 = vpop.permute.xlu1 %1163 }
 0x282   : > { %v1171_v34 = vsel %vm293_vm0, 0.0, %v1164_v30 }
 0x285   : > { %v1166_v31 = vpop.permute.xlu1 %1165 }
 0x286   : > { %v1167_v32 = vsel %vm293_vm0, %v1164_v30, %v1166_v31  ;;  %v1172_v33 = vsel %vm293_vm0, %v1166_v31, 0.0 }
 0x287   : > { %1184 = vrot.lane.b32.xlu1 %v1172_v33, %s3149_s22  ;;  %1182 = vrot.lane.b32.xlu0 %v1167_v32, %s3149_s22 }
 0x28b   : > { %1341 = vrot.lane.b32.xlu1 %v1167_v32, %s3152_s29  ;;  %1180 = vrot.lane.b32.xlu0 %v1171_v34, %s3149_s22 }
 0x28f   : > { %1339 = vrot.lane.b32.xlu1 %v1171_v34, %s3152_s29  ;;  %1343 = vrot.lane.b32.xlu0 %v1172_v33, %s3152_s29 }
 0x293   : > { %1433 = vrot.lane.b32.xlu1 %v1172_v33, %s3153_s8  ;;  %1431 = vrot.lane.b32.xlu0 %v1167_v32, %s3153_s8 }
 0x297   : > { %1523 = vrot.lane.b32.xlu1 %v1167_v32, %s3147_s20  ;;  %1429 = vrot.lane.b32.xlu0 %v1171_v34, %s3153_s8 }
 0x29b   : > { %1521 = vrot.lane.b32.xlu1 %v1171_v34, %s3147_s20  ;;  %1525 = vrot.lane.b32.xlu0 %v1172_v33, %s3147_s20 }
 0x29f   : > { %1611 = vrot.lane.b32.xlu1 %v1172_v33, %s3146_s19  ;;  %1609 = vrot.lane.b32.xlu0 %v1167_v32, %s3146_s19 }
 0x2a3   : > { %1699 = vrot.lane.b32.xlu1 %v1167_v32, %s3148_s21  ;;  %1607 = vrot.lane.b32.xlu0 %v1171_v34, %s3146_s19 }
 0x2a7   : > { %1697 = vrot.lane.b32.xlu1 %v1171_v34, %s3148_s21  ;;  %1701 = vrot.lane.b32.xlu0 %v1172_v33, %s3148_s21 }
 0x2ab   : > { %1793 = vrot.lane.b32.xlu1 %v1172_v33, %s3151_s23  ;;  %1791 = vrot.lane.b32.xlu0 %v1167_v32, %s3151_s23 }
 0x2af   : > { %1877 = vrot.lane.b32.xlu1 %v1167_v32, %s3154_s9  ;;  %1789 = vrot.lane.b32.xlu0 %v1171_v34, %s3151_s23 }
 0x2b3   : > { %1875 = vrot.lane.b32.xlu1 %v1171_v34, %s3154_s9  ;;  %1879 = vrot.lane.b32.xlu0 %v1172_v33, %s3154_s9 }
 0x2b7   : > { %1968 = vperm.xlu0 %3078, %v1965_v35  }
 0x2f9   : > { %v1185_v36 = vpop.permute.xlu1 %1184  ;;  %v1183_v37 = vpop.permute.xlu0 %1182 }
 0x2fa   : > { %v1187_v39 = vsel %vm317_vm7, %v1183_v37, %v1185_v36 }
 0x2fb   : > { %1194 = vmatprep.subr.mxu1 %v1187_v39  ;;  %v2778_v39 = vld [vmem:[%s3713_s6] sm:$0x3] }
 0x2fd   : > { %v1342_v40 = vpop.permute.xlu1 %1341  ;;  %v1181_v42 = vpop.permute.xlu0 %1180 }
 0x2fe   : > { %v1186_v44 = vsel %vm317_vm7, %v1181_v42, %v1183_v37 }
 0x2ff   : > { %1195 = vmatpush1.msra.mxu1 %v1186_v44 }
 0x300   : > { %2915 = vmatmul.mubr.msk.f32.vlgmr.msra.gmra.mrb[2].mxu1 %vm1190_vm15, %v2914_v43  ;;  %2916 = vmatprep.subr.msk.mxu1 %vm3331_vm8, %v1167_v32 }
 0x301   : > { %v1340_v45 = vpop.permute.xlu1 %1339  ;;  %2917 = vmatpush1.msk.msra.mxu1 %vm3337_vm9, %v1171_v34  ;;  %v1344_v46 = vpop.permute.xlu0 %1343  ;;  %1332 = vmatprep.mubr.f32.mxu1 %v3150_v4 }
 0x302   : > { %v1346_v47 = vsel %vm490_vm11, %v1342_v40, %v1344_v46  ;;  %v1345_v51 = vsel %vm490_vm11, %v1340_v45, %v1342_v40  ;;  %v2943_v46 = vld [vmem:[%s3712_s5 + $0x2] sm:$0x3] }
 0x303   : > { %2920 = vmatprep.subr.msk.mxu1 %vm3317_vm6, %v1346_v47 }
 0x305   : > { %v1434_v48 = vpop.permute.xlu1 %1433  ;;  %v1432_v49 = vpop.permute.xlu0 %1431 }
 0x306   : > { %v1436_v52 = vsel %vm587_vm13, %v1432_v49, %v1434_v48 }
 0x308   : > { %2918 = vmatmul.mubr.msk.f32.vlgmr.msra.gmra.mrb[2].mxu1 %vm1190_vm15, %v1175_v50 }
 0x309   : > { %2921 = vmatpush1.msk.msra.mxu1 %vm3313_vm5, %v1345_v51  ;;  %v1524_v53 = vpop.permute.xlu1 %1523  ;;  %v1430_v54 = vpop.permute.xlu0 %1429  ;;  %1420 = vmatprep.mubr.f32.mxu1 %v3150_v4 }
 0x30a   : > { %2924 = vmatprep.subr.msk.mxu1 %vm3331_vm8, %v1436_v52  ;;  %v1435_v58 = vsel %vm587_vm13, %v1430_v54, %v1432_v49 }
 0x30d   : > { %v1526_v55 = vpop.permute.xlu0 %1525  ;;  %v1522_v57 = vpop.permute.xlu1 %1521 }
 0x30e   : > { %v1528_v59 = vsel %vm686_vm2, %v1524_v53, %v1526_v55  ;;  %v1527_v0 = vsel %vm686_vm2, %v1522_v57, %v1524_v53  ;;  %v1989_v53 = vld [vmem:[%s3712_s5] sm:$0x3] }
 0x310   : > { %2922 = vmatmul.mubr.msk.f32.vlgmr.msra.gmra.mrb[2].mxu1 %vm1190_vm15, %v2919_v56 }
 0x311   : > { %2925 = vmatpush1.msk.msra.mxu1 %vm3337_vm9, %v1435_v58  ;;  %v1610_v60 = vpop.permute.xlu0 %1609  ;;  %1510 = vmatprep.mubr.f32.mxu1 %v3150_v4  ;;  %v1612_v61 = vpop.permute.xlu1 %1611 }
 0x312   : > { %1534 = vmatprep.subr.mxu1 %v1528_v59  ;;  %v1614_v1 = vsel %vm775_vm4, %v1610_v60, %v1612_v61  ;;  %v2948_v59 = vld [vmem:[%s3712_s5 + $0x4] sm:$0x3] }
 0x315   : > { %v1608_v63 = vpop.permute.xlu0 %1607  ;;  %v1700_v2 = vpop.permute.xlu1 %1699 }
 0x316   : > { %v1613_v6 = vsel %vm775_vm4, %v1608_v63, %v1610_v60 }
 0x318   : > { %2926 = vmatmul.mubr.msk.f32.vlgmr.msra.gmra.mrb[2].mxu1 %vm1190_vm15, %v2923_v62 }
 0x319   : > { %1535 = vmatpush1.msra.mxu1 %v1527_v0  ;;  %1598 = vmatprep.mubr.f32.mxu1 %v3150_v4  ;;  %v1702_v3 = vpop.permute.xlu0 %1701  ;;  %v1698_v7 = vpop.permute.xlu1 %1697 }
 0x31a   : > { %2930 = vmatprep.subr.msk.mxu1 %vm3317_vm6, %v1614_v1  ;;  %v1704_v8 = vsel %vm872_vm10, %v1700_v2, %v1702_v3  ;;  %v1703_v12 = vsel %vm872_vm10, %v1698_v7, %v1700_v2  ;;  %v2952_v1 = vld [vmem:[%s3712_s5 + $0x6] sm:$0x3] }
 0x31d   : > { %v1792_v9 = vpop.permute.xlu0 %1791  ;;  %v1794_v11 = vpop.permute.xlu1 %1793 }
 0x31e   : > { %v1796_v14 = vsel %vm971_vm12, %v1792_v9, %v1794_v11 }
 0x320   : > { %2928 = vmatmul.mubr.msk.f32.vlgmr.msra.gmra.mrb[2].mxu1 %vm1190_vm15, %v2927_v5 }
 0x321   : > { %2931 = vmatpush1.msk.msra.mxu1 %vm3313_vm5, %v1613_v6  ;;  %1688 = vmatprep.mubr.f32.mxu1 %v3150_v4  ;;  %v1790_v13 = vpop.permute.xlu0 %1789  ;;  %v1878_v17 = vpop.permute.xlu1 %1877 }
 0x322   : > { %2934 = vmatprep.subr.msk.mxu1 %vm3331_vm8, %v1704_v8  ;;  %v1795_v18 = vsel %vm971_vm12, %v1790_v13, %v1792_v9  ;;  %v2956_v8 = vld [vmem:[%s3712_s5 + $0x8] sm:$0x3]  ;;  %v2958_v13 = vld [vmem:[%s3712_s5 + $0xa] sm:$0x3] }
 0x325   : > { %v1880_v16 = vpop.permute.xlu0 %1879  ;;  %v1876_v20 = vpop.permute.xlu1 %1875 }
 0x326   : > { %v1882_v19 = vsel %vm1060_vm14, %v1878_v17, %v1880_v16  ;;  %v1881_v22 = vsel %vm1060_vm14, %v1876_v20, %v1878_v17 }
 0x328   : > { %2932 = vmatmul.mubr.msk.f32.vlgmr.msra.gmra.mrb[2].mxu1 %vm1190_vm15, %v2929_v10 }
 0x329   : > { %2935 = vmatpush1.msk.msra.mxu1 %vm3337_vm9, %v1703_v12  ;;  %1778 = vmatprep.mubr.f32.mxu1 %v3150_v4 }
 0x32a   : > { %1802 = vmatprep.subr.mxu1 %v1796_v14 }
 0x330   : > { %2936 = vmatmul.mubr.msk.f32.vlgmr.msra.gmra.mrb[2].mxu1 %vm1190_vm15, %v2933_v15 }
 0x331   : > { %1803 = vmatpush1.msra.mxu1 %v1795_v18  ;;  %1866 = vmatprep.mubr.f32.mxu1 %v3150_v4 }
 0x332   : > { %2940 = vmatprep.subr.msk.mxu1 %vm3317_vm6, %v1882_v19 }
 0x336   : > { %v1969_v24 = vpop.permute.xlu0 %1968 }
 0x338   : > { %2938 = vmatmul.mubr.msk.f32.vlgmr.msra.gmra.mrb[2].mxu1 %vm1190_vm15, %v2937_v21 }
 0x339   : > { %2941 = vmatpush1.msk.msra.mxu1 %vm3313_vm5, %v1881_v22  ;;  %1956 = vmatprep.mubr.f32.mxu1 %v3150_v4  ;;  %v2966_v22 = vld [vmem:[%s3712_s5 + $0xe] sm:$0x3] }
 0x340   : > { %2942 = vmatmul.mubr.msk.f32.vlgmr.msra.gmra.mrb[2].mxu1 %vm1190_vm15, %v2939_v23 }
 0x413   : > { %v1958_v25 = vpop.f32.mrb[2].mxu1 }
 0x414   : > { %v1971_v26 = vadd.f32 %v1969_v24, %v1958_v25  ;;  %v1960_v27 = vpop.f32.mrb[3].mxu1 }
 0x415   : > { %v1972_v30 = vadd.f32 %v1969_v24, %v1960_v27 }
 0x416   : > { %v1973_v31 = vmax.f32 %v1971_v26, 0.0 }
 0x417   : > { %v1974_v32 = vmax.f32 %v1972_v30, 0.0 }
 0x418   : > { %1977 = vrot.lane.b32.xlu1 %v1973_v31, %s3145_s18 }
 0x419   : > { %1979 = vrot.lane.b32.xlu0 %v1974_v32, %s3145_s18 }
 0x48a   : > { %v1978_v33 = vpop.permute.xlu1 %1977 }
 0x48b   : > { %v1980_v34 = vpop.permute.xlu0 %1979  ;;  %v1985_v37 = vsel %vm293_vm0, 0.0, %v1978_v33 }
 0x48c   : > { %v1981_v35 = vsel %vm293_vm0, %v1978_v33, %v1980_v34  ;;  %v1986_v36 = vsel %vm293_vm0, %v1980_v34, 0.0 }
 0x48d   : > { %1998 = vrot.lane.b32.xlu0 %v1986_v36, %s3149_s22  ;;  %1996 = vrot.lane.b32.xlu1 %v1981_v35, %s3149_s22 }
 0x491   : > { %2154 = vrot.lane.b32.xlu0 %v1981_v35, %s3152_s29  ;;  %1994 = vrot.lane.b32.xlu1 %v1985_v37, %s3149_s22 }
 0x495   : > { %2152 = vrot.lane.b32.xlu0 %v1985_v37, %s3152_s29  ;;  %2156 = vrot.lane.b32.xlu1 %v1986_v36, %s3152_s29  ;;  %s269_s29 = sand.u32 1, %s3135_s25  }
 0x496   : > { %s2799_s18 = scalar_lea.sflag [#allocation3], %s269_s29 }
 0x499   : > { %2246 = vrot.lane.b32.xlu0 %v1986_v36, %s3153_s8  ;;  %2244 = vrot.lane.b32.xlu1 %v1981_v35, %s3153_s8 }
 0x49d   : > { %2336 = vrot.lane.b32.xlu0 %v1981_v35, %s3147_s20  ;;  %2242 = vrot.lane.b32.xlu1 %v1985_v37, %s3153_s8  ;;  %s2876_s8 = sshll.u32 %s269_s29, 2 }
 0x49e   : > { %s271_s13 = scalar_lea.vmem [#allocation2], %s2876_s8 }
 0x49f   : > { %s2813_s14 = sshll.u32 %s271_s13, 4  ;;  %s3667_s14 = int_to_ptr.vmem [resolvable:$true] %s2813_s14 }
 0x4a1   : > { %2334 = vrot.lane.b32.xlu0 %v1985_v37, %s3147_s20  ;;  %2338 = vrot.lane.b32.xlu1 %v1986_v36, %s3147_s20  ;;  %s3081_s20 = scalar_lea.vmem %s3667_s14, 64 }
 0x4a2   : > { %p3082_p11 = scmp.ne.s32.totalorder %s3667_s14, %s3081_s20 }
 0x4a4   : > { %p3083_p12 = pnand %p3082_p11, %p3235_p5 }
 0x4a5   : > { %2424 = vrot.lane.b32.xlu0 %v1986_v36, %s3146_s19  ;;  %2422 = vrot.lane.b32.xlu1 %v1981_v35, %s3146_s19 }
 0x4a6   : > { %p3084_p13 = pneg %p3083_p12 }
 0x4a9   : > { %2512 = vrot.lane.b32.xlu0 %v1981_v35, %s3148_s21  ;;  %2420 = vrot.lane.b32.xlu1 %v1985_v37, %s3146_s19 }
 0x4ad   : > { %2510 = vrot.lane.b32.xlu0 %v1985_v37, %s3148_s21  ;;  %2514 = vrot.lane.b32.xlu1 %v1986_v36, %s3148_s21 }
 0x4b1   : > { %2606 = vrot.lane.b32.xlu0 %v1986_v36, %s3151_s23  ;;  %2604 = vrot.lane.b32.xlu1 %v1981_v35, %s3151_s23 }
 0x4b5   : > { %2690 = vrot.lane.b32.xlu0 %v1981_v35, %s3154_s9  ;;  %2602 = vrot.lane.b32.xlu1 %v1985_v37, %s3151_s23 }
 0x4b9   : > { %2688 = vrot.lane.b32.xlu0 %v1985_v37, %s3154_s9  ;;  %2692 = vrot.lane.b32.xlu1 %v1986_v36, %s3154_s9  ;;  %s2979_s9 = sshll.u32 %s3218_s28, 6  ;;  %s3156_s28 = smov [#allocation2]  }
 0x4ba   : > { %s3665_s17 = scalar_lea.hbm %s3714_s7, %s2979_s9  ;;  %s3085_s19 = sshll.u32 %s3156_s28, 4  ;;  %s3086_s19 = int_to_ptr.vmem [resolvable:$false] %s3085_s19 }
 0x4bb   : > { %s3087_s21 = scalar_lea.vmem %s3086_s19, 128  ;;  %p3088_p0 = scmp.lt.s32.totalorder %s3667_s14, %s3086_s19 }
 0x4bc   : > { %p3089_p1 = scmp.lt.s32.totalorder %s3087_s21, %s3081_s20 }
 0x4bd   : > { %2781 = vperm.xlu1 %3079, %v2778_v39  }
 0x4be   : > { %p3090_p2 = por %p3089_p1, %p3088_p0 }
 0x4c0   : > { %p3091_p3 = pnand %p3090_p2, %p3084_p13 }
 0x4ff   : > { %v1999_v40 = vpop.permute.xlu0 %1998  ;;  %v1997_v42 = vpop.permute.xlu1 %1996 }
 0x500   : > { %v2001_v43 = vsel %vm317_vm7, %v1997_v42, %v1999_v40 }
 0x501   : > { %2007 = vmatprep.subr.mxu0 %v2001_v43 }
 0x503   : > { %v2155_v44 = vpop.permute.xlu0 %2154  ;;  %v1995_v45 = vpop.permute.xlu1 %1994 }
 0x504   : > { %v2000_v47 = vsel %vm317_vm7, %v1995_v45, %v1997_v42 }
 0x505   : > { %2008 = vmatpush1.msra.mxu0 %v2000_v47 }
 0x506   : > { %2944 = vmatmul.mubr.msk.f32.vlgmr.msra.gmra.mrb[2].mxu0 %vm1190_vm15, %v2943_v46  ;;  %2945 = vmatprep.subr.msk.mxu0 %vm3331_vm8, %v1981_v35 }
 0x507   : > { %v2153_v48 = vpop.permute.xlu0 %2152  ;;  %2946 = vmatpush1.msk.msra.mxu0 %vm3337_vm9, %v1985_v37  ;;  %v2157_v49 = vpop.permute.xlu1 %2156  ;;  %2145 = vmatprep.mubr.f32.mxu0 %v3150_v4 }
 0x508   : > { %v2159_v50 = vsel %vm490_vm11, %v2155_v44, %v2157_v49  ;;  %v2158_v54 = vsel %vm490_vm11, %v2153_v48, %v2155_v44 }
 0x509   : > { %2949 = vmatprep.subr.msk.mxu0 %vm3317_vm6, %v2159_v50 }
 0x50b   : > { %v2247_v51 = vpop.permute.xlu0 %2246  ;;  %v2245_v52 = vpop.permute.xlu1 %2244 }
 0x50c   : > { %v2249_v55 = vsel %vm587_vm13, %v2245_v52, %v2247_v51 }
 0x50e   : > { %2947 = vmatmul.mubr.msk.f32.vlgmr.msra.gmra.mrb[2].mxu0 %vm1190_vm15, %v1989_v53 }
 0x50f   : > { %2950 = vmatpush1.msk.msra.mxu0 %vm3313_vm5, %v2158_v54  ;;  %v2337_v56 = vpop.permute.xlu0 %2336  ;;  %v2243_v57 = vpop.permute.xlu1 %2242  ;;  %2233 = vmatprep.mubr.f32.mxu0 %v3150_v4 }
 0x510   : > { %2953 = vmatprep.subr.msk.mxu0 %vm3331_vm8, %v2249_v55  ;;  %v2248_v61 = vsel %vm587_vm13, %v2243_v57, %v2245_v52 }
 0x513   : > { %v2339_v58 = vpop.permute.xlu1 %2338  ;;  %v2335_v60 = vpop.permute.xlu0 %2334 }
 0x514   : > { %v2341_v62 = vsel %vm686_vm2, %v2337_v56, %v2339_v58  ;;  %v2340_v3 = vsel %vm686_vm2, %v2335_v60, %v2337_v56 }
 0x516   : > { %2951 = vmatmul.mubr.msk.f32.vlgmr.msra.gmra.mrb[2].mxu0 %vm1190_vm15, %v2948_v59 }
 0x517   : > { %2954 = vmatpush1.msk.msra.mxu0 %vm3337_vm9, %v2248_v61  ;;  %v2423_v63 = vpop.permute.xlu1 %2422  ;;  %2323 = vmatprep.mubr.f32.mxu0 %v3150_v4  ;;  %v2425_v0 = vpop.permute.xlu0 %2424 }
 0x518   : > { %2347 = vmatprep.subr.mxu0 %v2341_v62  ;;  %v2427_v5 = vsel %vm775_vm4, %v2423_v63, %v2425_v0 }
 0x51b   : > { %v2421_v2 = vpop.permute.xlu1 %2420  ;;  %v2513_v6 = vpop.permute.xlu0 %2512 }
 0x51c   : > { %v2426_v9 = vsel %vm775_vm4, %v2421_v2, %v2423_v63 }
 0x51e   : > { %2955 = vmatmul.mubr.msk.f32.vlgmr.msra.gmra.mrb[2].mxu0 %vm1190_vm15, %v2952_v1 }
 0x51f   : > { %2348 = vmatpush1.msra.mxu0 %v2340_v3  ;;  %2411 = vmatprep.mubr.f32.mxu0 %v3150_v4  ;;  %v2515_v7 = vpop.permute.xlu1 %2514  ;;  %v2511_v10 = vpop.permute.xlu0 %2510 }
 0x520   : > { %2959 = vmatprep.subr.msk.mxu0 %vm3317_vm6, %v2427_v5  ;;  %v2517_v11 = vsel %vm872_vm10, %v2513_v6, %v2515_v7  ;;  %v2516_v15 = vsel %vm872_vm10, %v2511_v10, %v2513_v6 }
 0x523   : > { %v2605_v12 = vpop.permute.xlu1 %2604  ;;  %v2607_v14 = vpop.permute.xlu0 %2606 }
 0x524   : > { %v2609_v17 = vsel %vm971_vm12, %v2605_v12, %v2607_v14 }
 0x526   : > { %2957 = vmatmul.mubr.msk.f32.vlgmr.msra.gmra.mrb[2].mxu0 %vm1190_vm15, %v2956_v8 }
 0x527   : > { %2960 = vmatpush1.msk.msra.mxu0 %vm3313_vm5, %v2426_v9  ;;  %2501 = vmatprep.mubr.f32.mxu0 %v3150_v4  ;;  %v2603_v16 = vpop.permute.xlu1 %2602  ;;  %v2691_v19 = vpop.permute.xlu0 %2690 }
 0x528   : > { %2963 = vmatprep.subr.msk.mxu0 %vm3331_vm8, %v2517_v11  ;;  %v2608_v20 = vsel %vm971_vm12, %v2603_v16, %v2605_v12 }
 0x52b   : > { %v2693_v18 = vpop.permute.xlu1 %2692  ;;  %v2689_v41 = vpop.permute.xlu0 %2688 }
 0x52c   : > { %v2695_v21 = vsel %vm1060_vm14, %v2691_v19, %v2693_v18  ;;  %v2694_v23 = vsel %vm1060_vm14, %v2689_v41, %v2691_v19 }
 0x52e   : > { %2961 = vmatmul.mubr.msk.f32.vlgmr.msra.gmra.mrb[2].mxu0 %vm1190_vm15, %v2958_v13 }
 0x52f   : > { %2964 = vmatpush1.msk.msra.mxu0 %vm3337_vm9, %v2516_v15  ;;  %2591 = vmatprep.mubr.f32.mxu0 %v3150_v4 }
 0x530   : > { %2615 = vmatprep.subr.mxu0 %v2609_v17 }
 0x536   : > { %2965 = vmatmul.mubr.msk.f32.vlgmr.msra.gmra.mrb[2].mxu0 %vm1190_vm15, %v2962_v38 }
 0x537   : > { %2616 = vmatpush1.msra.mxu0 %v2608_v20  ;;  %2679 = vmatprep.mubr.f32.mxu0 %v3150_v4 }
 0x538   : > { %2969 = vmatprep.subr.msk.mxu0 %vm3317_vm6, %v2695_v21 }
 0x53c   : > { %v2782_v24 = vpop.permute.xlu1 %2781 }
 0x53e   : > { %2967 = vmatmul.mubr.msk.f32.vlgmr.msra.gmra.mrb[2].mxu0 %vm1190_vm15, %v2966_v22 }
 0x53f   : > { %2970 = vmatpush1.msk.msra.mxu0 %vm3313_vm5, %v2694_v23  ;;  %2769 = vmatprep.mubr.f32.mxu0 %v3150_v4 }
 0x546   : > { %2971 = vmatmul.mubr.msk.f32.vlgmr.msra.gmra.mrb[2].mxu0 %vm1190_vm15, %v2968_v29 }
 0x619   : > { %v2771_v25 = vpop.f32.mrb[2].mxu0 }
 0x61a   : > { %v2784_v26 = vadd.f32 %v2782_v24, %v2771_v25  ;;  %v2773_v27 = vpop.f32.mrb[3].mxu0 }
 0x61b   : > { %v2785_v28 = vadd.f32 %v2782_v24, %v2773_v27 }
 0x61d   : > { %v2788_v30 = vcombine.low %v2784_v26, %v2785_v28 }
 0x61f   : > { %2972 = vst.sshfl [vmem:[%s271_s13] sm:$0x33 pattern:$0x76325410] %v2788_v30 }
 0x620   : > { %3094 = shalt.err (!%p3091_p3)
}
 0x621   : > { %s3095_s22 = scalar_lea.hbm %s3665_s17, 64  ;;  %s3099_s8 = scalar_lea.hbm %s3714_s7, 128 }
 0x622   : > { %p3096_p4 = scmp.ne.s32.totalorder %s3665_s17, %s3095_s22  ;;  %p3100_p9 = scmp.lt.u32.totalorder %s3665_s17, %s3714_s7 }
 0x623   : > { %p3101_p10 = scmp.lt.u32.totalorder %s3099_s8, %s3095_s22  ;;  %p3103_p12 = scmp.lt.u32.totalorder %s3095_s22, %s3665_s17 }
 0x624   : > { %p3097_p7 = pnand %p3096_p4, %p3235_p5 }
 0x625   : > { %p3102_p11 = por %p3101_p10, %p3100_p9 }
 0x626   : > { %p3098_p8 = pneg %p3097_p7 }
 0x627   : > { %p3104_p13 = por %p3103_p12, %p3102_p11 }
 0x629   : > { %p3105_p0 = pnand %p3104_p13, %p3098_p8 }
 0x62b   : > { %3108 = shalt.err (!%p3105_p0)
}
 0x62c   : > { %3028 = dma.vmem_to_hbm [thread:$0]  (%p3235_p5), %s3667_s14, 64, %s3665_s17, %s2799_s18  }
 0x62d PF: > { %p3034_p1 = scmp.ge.s32.totalorder %s3143_s27, 2  ;;  %s2825_s15 = sand.u32 1, %s3131_s24  }
 0x62e   : > { %s2826_s16 = scalar_lea.sflag [#allocation3], %s2825_s15 }
 0x62f   : > { %p3031_p2 = pnand %p3034_p1, %p3239_p6 }
 0x631   : > { %3126 = dma.done.wait (!%p3031_p2), %s2826_s16, 64  }
 0x632   : > { %3128 = vsyncadd (!%p3031_p2), %s2826_s16, 4294967232  ;;  %p17_p3 = scmp.ge.s32.totalorder %s3222_s30, 4   ;;  %s3725_s24 = smov %s3135_s25 }
 0x633   : > { %s3726_s25 = smov %s3139_s26  ;;  %s3727_s26 = smov %s3233_s10 }
 0x634   : > { %s3728_s27 = smov %s3222_s30  ;;  %19 = sbr.rel (!%p17_p3) target bundleno = 3 (0x3), region = 107 }
 0x63b   :  { %2831 = vsyncpa [#allocation3], 1 }
 0x63c   :  { %2833 = vsyncpa [#allocation3 + $0x1], 1 }

</bundles_post_ra>
